<compile_context>
chip_gen: v6e
topology: v6e:2x2x1
jax: 0.10.0
libtpu: 0.0.40
codegen_flags: <defaults>
</compile_context>

<pallas_src>
import jax
import jax.numpy as jnp
from jax.experimental import pallas as pl
from jax.experimental.pallas import tpu as pltpu

BN_EPS = 1e-5
LANES = 128              # lane width; all feature dims padded to this
NUM_LAYERS = 11          # linear layers in forward order
N_BN = 9                 # layers followed by BatchNorm
B21_ROW = 2 * N_BN       # row of fc21 bias in vec_slab
B22_ROW = 2 * N_BN + 1   # row of fc22 bias in vec_slab
VEC_ROWS = 2 * N_BN + 2  # 20 rows total


# (din, dout, has_bn) in forward order, matching the PyTorch module
def layer_defs(D_in, H=50, H2=12, latent_dim=3):
    return [
        (D_in, H, True),                 # linear1 / lin_bn1
        (H, H2, True),                   # linear2 / lin_bn2
        (H2, H2, True),                  # linear3 / lin_bn3
        (H2, latent_dim, True),          # fc1     / bn1
        (latent_dim, latent_dim, False), # fc21  (bias kept)
        (latent_dim, latent_dim, False), # fc22  (bias kept)
        (latent_dim, latent_dim, True),  # fc3     / fc_bn3
        (latent_dim, H2, True),          # fc4     / fc_bn4
        (H2, H2, True),                  # linear4 / lin_bn4
        (H2, H, True),                   # linear5 / lin_bn5
        (H, D_in, True),                 # linear6 / lin_bn6
    ]


# ----------------------------------------------------------------------------
# Kernel
# ----------------------------------------------------------------------------
def autoencoder_kernel(io_ref, w_ref, v_ref, out_ref):
    # io_ref:  [2, N, 128]        row-block 0: x (cols 0:D_in), row-block 1: eps
    # w_ref:   [11, 128, 128]     weight i ([in,out]) zero-padded into block i
    # v_ref:   [20, 128]          gamma_k -> row 2k, beta_k -> row 2k+1,
    #                             fc21 bias -> row 18, fc22 bias -> row 19
    # out_ref: [3, N, 128]        recon / mu / logvar, lane-padded

    def vrow(i):                       # static row slice -> [1, 128]
        return v_ref[i : i + 1, :]

    def linear(h, i):                  # full-vreg MXU matmul, no bias
        return jnp.dot(h, w_ref[i], preferred_element_type=jnp.float32)

    def bn(h, k, relu=True):
        # training-mode BN (batch mean, biased variance) folded into one FMA
        mean = jnp.mean(h, axis=0, keepdims=True)            # [1,128] (XLU)
        d = h - mean
        var = jnp.mean(d * d, axis=0, keepdims=True)
        scale = vrow(2 * k) * jax.lax.rsqrt(var + BN_EPS)     # gamma * rsqrt
        shift = vrow(2 * k + 1) - mean * scale                # beta - mean*scale
        out = h * scale + shift                               # single bulk FMA
        return jnp.maximum(out, 0.0) if relu else out

    x = io_ref[0]
    eps = io_ref[1]

    # ---- encode ----
    h = bn(linear(x, 0), 0)            # linear1 + lin_bn1 + relu
    h = bn(linear(h, 1), 1)            # linear2 + lin_bn2 + relu
    h = bn(linear(h, 2), 2)            # linear3 + lin_bn3 + relu
    h = bn(linear(h, 3), 3)            # fc1     + bn1     + relu
    mu = linear(h, 4) + vrow(B21_ROW)        # fc21
    logvar = linear(h, 5) + vrow(B22_ROW)    # fc22

    # ---- reparameterize (training mode: z = eps * std + mu) ----
    z = eps * jnp.exp(0.5 * logvar) + mu

    # ---- decode ----
    h = bn(linear(z, 6), 4)            # fc3     + fc_bn3  + relu
    h = bn(linear(h, 7), 5)            # fc4     + fc_bn4  + relu
    h = bn(linear(h, 8), 6)            # linear4 + lin_bn4 + relu
    h = bn(linear(h, 9), 7)            # linear5 + lin_bn5 + relu
    recon = bn(linear(h, 10), 8, relu=False)   # linear6 + lin_bn6 (no relu)

    # single lane-dense packed output (3 full-tile stores, one writeback DMA)
    out_ref[0] = recon
    out_ref[1] = mu
    out_ref[2] = logvar


# ----------------------------------------------------------------------------
# Parameter construction / packing
# ----------------------------------------------------------------------------
def make_params(key, D_in, H=50, H2=12, latent_dim=3):
    """Synthetic parameters mirroring the PyTorch module (weights pre-transposed
    to [in, out]). All biases are generated (module semantics); the kernel
    simply does not consume the ones that cancel under training-mode BN."""
    params = []
    for (din, dout, has_bn) in layer_defs(D_in, H, H2, latent_dim):
        key, kw, kb, kg, kt = jax.random.split(key, 5)
        scale = 1.0 / jnp.sqrt(jnp.float32(din))
        p = {
            "w": jax.random.normal(kw, (din, dout), jnp.float32) * scale,
            "b": jax.random.normal(kb, (dout,), jnp.float32) * 0.05,
            "g": None,
            "t": None,
        }
        if has_bn:
            p["g"] = 1.0 + 0.1 * jax.random.normal(kg, (dout,), jnp.float32)
            p["t"] = 0.05 * jax.random.normal(kt, (dout,), jnp.float32)
        params.append(p)
    return params


def pack_params(params):
    """Pack the 11 weights into one [11,128,128] slab and all per-feature
    vectors into one [20,128] slab (zero-padded). Done once, outside forward."""
    w_slab = jnp.zeros((NUM_LAYERS, LANES, LANES), jnp.float32)
    v_slab = jnp.zeros((VEC_ROWS, LANES), jnp.float32)
    bn_k = 0
    for i, p in enumerate(params):
        din, dout = p["w"].shape
        w_slab = w_slab.at[i, :din, :dout].set(p["w"])
        if p["g"] is not None:
            v_slab = v_slab.at[2 * bn_k, :dout].set(p["g"])
            v_slab = v_slab.at[2 * bn_k + 1, :dout].set(p["t"])
            bn_k += 1
    # only fc21 (idx 4) and fc22 (idx 5) keep their biases (others cancel in BN)
    v_slab = v_slab.at[B21_ROW, : params[4]["w"].shape[1]].set(params[4]["b"])
    v_slab = v_slab.at[B22_ROW, : params[5]["w"].shape[1]].set(params[5]["b"])
    return w_slab, v_slab


# ----------------------------------------------------------------------------
# Wrapper
# ----------------------------------------------------------------------------
def autoencoder_forward(x, eps, w_slab, v_slab, real_flops):
    N, D_in = x.shape
    latent_dim = eps.shape[1]

    # pack both activations into ONE lane-padded input slab (single DMA)
    io_slab = jnp.zeros((2, N, LANES), jnp.float32)
    io_slab = io_slab.at[0, :, :D_in].set(x)
    io_slab = io_slab.at[1, :, :latent_dim].set(eps)

    bytes_accessed = 4 * int(io_slab.size + w_slab.size + v_slab.size + 3 * N * LANES)
    cost = pl.CostEstimate(
        flops=real_flops,
        transcendentals=N * LANES + N_BN * LANES,  # exp for std + rsqrt per BN
        bytes_accessed=bytes_accessed,
    )

    out = pl.pallas_call(
        autoencoder_kernel,
        out_shape=jax.ShapeDtypeStruct((3, N, LANES), jnp.float32),
        in_specs=[pl.BlockSpec(memory_space=pltpu.MemorySpace.VMEM)] * 3,
        out_specs=pl.BlockSpec(memory_space=pltpu.MemorySpace.VMEM),
        cost_estimate=cost,
        # no grid: single invocation is optimal at this latency-bound size
        compiler_params=pltpu.CompilerParams(),
    )(io_slab, w_slab, v_slab)

    recon = out[0, :, :D_in]
    mu = out[1, :, :latent_dim]
    logvar = out[2, :, :latent_dim]
    return recon, mu, logvar


# ----------------------------------------------------------------------------
# Pure-JAX reference (full module semantics, including the redundant biases)
# ----------------------------------------------------------------------------
def reference_forward(x, eps, params):
    def lin(h, p):
        return h @ p["w"] + p["b"]

    def bn(h, p):
        mean = jnp.mean(h, axis=0, keepdims=True)
        var = jnp.mean((h - mean) ** 2, axis=0, keepdims=True)
        return (h - mean) / jnp.sqrt(var + BN_EPS) * p["g"] + p["t"]

    relu = lambda h: jnp.maximum(h, 0.0)

    h = relu(bn(lin(x, params[0]), params[0]))
    h = relu(bn(lin(h, params[1]), params[1]))
    h = relu(bn(lin(h, params[2]), params[2]))
    h = relu(bn(lin(h, params[3]), params[3]))
    mu = lin(h, params[4])
    logvar = lin(h, params[5])
    z = eps * jnp.exp(0.5 * logvar) + mu
    h = relu(bn(lin(z, params[6]), params[6]))
    h = relu(bn(lin(h, params[7]), params[7]))
    h = relu(bn(lin(h, params[8]), params[8]))
    h = relu(bn(lin(h, params[9]), params[9]))
    recon = bn(lin(h, params[10]), params[10])
    return recon, mu, logvar


if __name__ == "__main__":
    D_in, H, H2, latent_dim = 16, 50, 12, 3
    N = 8  # multiple of 8 keeps the batch on full f32 sublanes

    key = jax.random.PRNGKey(0)
    kx, keps, kp = jax.random.split(key, 3)
    x = jax.random.normal(kx, (N, D_in), jnp.float32)
    # deterministic stand-in for torch.randn_like in reparameterize()
    eps = jax.random.normal(keps, (N, latent_dim), jnp.float32)
    params = make_params(kp, D_in, H, H2, latent_dim)

    # pack parameters once (slabs are reused across forward calls)
    w_slab, v_slab = pack_params(params)
    real_flops = 2 * N * sum(int(p["w"].shape[0] * p["w"].shape[1]) for p in params)

    recon, mu, logvar = autoencoder_forward(x, eps, w_slab, v_slab, real_flops)
    jax.block_until_ready((recon, mu, logvar))

    recon_ref, mu_ref, logvar_ref = reference_forward(x, eps, params)

    assert recon.shape == (N, D_in)
    assert mu.shape == (N, latent_dim)
    assert logvar.shape == (N, latent_dim)
    # kernel drops the pre-BN biases (mathematically cancelled by the batch-mean
    # subtraction); differences vs. the full-bias reference are pure rounding.
    assert jnp.allclose(recon, recon_ref, atol=2e-4, rtol=2e-4)
    assert jnp.allclose(mu, mu_ref, atol=2e-4, rtol=2e-4)
    assert jnp.allclose(logvar, logvar_ref, atol=2e-4, rtol=2e-4)

    print("KERNEL_OK")
</pallas_src>

<mosaic_0001>
module attributes {stable_mosaic.version = 11 : i64} {
  func.func @autoencoder_kernel(%arg0: memref<2x8x128xf32, #tpu.memory_space<vmem>>, %arg1: memref<11x128x128xf32, #tpu.memory_space<vmem>>, %arg2: memref<20x128xf32, #tpu.memory_space<vmem>>, %arg3: memref<3x8x128xf32, #tpu.memory_space<vmem>>) attributes {dimension_semantics = [], scalar_prefetch = 0 : i64, scratch_operands = 0 : i64, tpu.core_type = #tpu.core_type<tc>} {
    %c0 = arith.constant 0 : index
    %c0_0 = arith.constant 0 : index
    %c0_1 = arith.constant 0 : index
    %0 = vector.load %arg0[%c0, %c0_0, %c0_1] : memref<2x8x128xf32, #tpu.memory_space<vmem>>, vector<1x8x128xf32>
    %1 = vector.shape_cast %0 : vector<1x8x128xf32> to vector<8x128xf32>
    %c1 = arith.constant 1 : index
    %c0_2 = arith.constant 0 : index
    %c0_3 = arith.constant 0 : index
    %2 = vector.load %arg0[%c1, %c0_2, %c0_3] : memref<2x8x128xf32, #tpu.memory_space<vmem>>, vector<1x8x128xf32>
    %3 = vector.shape_cast %2 : vector<1x8x128xf32> to vector<8x128xf32>
    %c0_4 = arith.constant 0 : index
    %c0_5 = arith.constant 0 : index
    %c0_6 = arith.constant 0 : index
    %4 = vector.load %arg1[%c0_4, %c0_5, %c0_6] : memref<11x128x128xf32, #tpu.memory_space<vmem>>, vector<1x128x128xf32>
    %5 = vector.shape_cast %4 : vector<1x128x128xf32> to vector<128x128xf32>
    %cst = arith.constant dense<0.000000e+00> : vector<8x128xf32>
    %6 = tpu.matmul %1, %5, %cst {dimension_numbers = #tpu.dot_dimension_numbers<[1], [0], [0], [1], [0, 0, 1, 1], [], []>} : vector<8x128xf32>, vector<128x128xf32>, vector<8x128xf32> -> vector<8x128xf32>
    %cst_7 = arith.constant dense<0.000000e+00> : vector<128xf32>
    %7 = vector.multi_reduction <add>, %6, %cst_7 [0] : vector<8x128xf32> to vector<128xf32>
    %8 = vector.shape_cast %7 : vector<128xf32> to vector<1x128xf32>
    %cst_8 = arith.constant 8.000000e+00 : f32
    %9 = vector.broadcast %cst_8 : f32 to vector<1x128xf32>
    %10 = arith.divf %8, %9 : vector<1x128xf32>
    %11 = vector.broadcast %10 : vector<1x128xf32> to vector<8x128xf32>
    %12 = arith.subf %6, %11 : vector<8x128xf32>
    %13 = arith.mulf %12, %12 : vector<8x128xf32>
    %cst_9 = arith.constant dense<0.000000e+00> : vector<128xf32>
    %14 = vector.multi_reduction <add>, %13, %cst_9 [0] : vector<8x128xf32> to vector<128xf32>
    %15 = vector.shape_cast %14 : vector<128xf32> to vector<1x128xf32>
    %cst_10 = arith.constant 8.000000e+00 : f32
    %16 = vector.broadcast %cst_10 : f32 to vector<1x128xf32>
    %17 = arith.divf %15, %16 : vector<1x128xf32>
    %c0_11 = arith.constant 0 : index
    %c0_12 = arith.constant 0 : index
    %18 = vector.load %arg2[%c0_11, %c0_12] : memref<20x128xf32, #tpu.memory_space<vmem>>, vector<1x128xf32>
    %cst_13 = arith.constant 9.99999974E-6 : f32
    %19 = vector.broadcast %cst_13 : f32 to vector<1x128xf32>
    %20 = arith.addf %17, %19 : vector<1x128xf32>
    %21 = math.rsqrt %20 : vector<1x128xf32>
    %22 = arith.mulf %18, %21 : vector<1x128xf32>
    %c1_14 = arith.constant 1 : index
    %c0_15 = arith.constant 0 : index
    %23 = vector.load %arg2[%c1_14, %c0_15] : memref<20x128xf32, #tpu.memory_space<vmem>>, vector<1x128xf32>
    %24 = arith.mulf %10, %22 : vector<1x128xf32>
    %25 = arith.subf %23, %24 : vector<1x128xf32>
    %26 = vector.broadcast %22 : vector<1x128xf32> to vector<8x128xf32>
    %27 = arith.mulf %6, %26 : vector<8x128xf32>
    %28 = vector.broadcast %25 : vector<1x128xf32> to vector<8x128xf32>
    %29 = arith.addf %27, %28 : vector<8x128xf32>
    %cst_16 = arith.constant 0.000000e+00 : f32
    %30 = vector.broadcast %cst_16 : f32 to vector<8x128xf32>
    %31 = arith.maximumf %29, %30 : vector<8x128xf32>
    %c1_17 = arith.constant 1 : index
    %c0_18 = arith.constant 0 : index
    %c0_19 = arith.constant 0 : index
    %32 = vector.load %arg1[%c1_17, %c0_18, %c0_19] : memref<11x128x128xf32, #tpu.memory_space<vmem>>, vector<1x128x128xf32>
    %33 = vector.shape_cast %32 : vector<1x128x128xf32> to vector<128x128xf32>
    %cst_20 = arith.constant dense<0.000000e+00> : vector<8x128xf32>
    %34 = tpu.matmul %31, %33, %cst_20 {dimension_numbers = #tpu.dot_dimension_numbers<[1], [0], [0], [1], [0, 0, 1, 1], [], []>} : vector<8x128xf32>, vector<128x128xf32>, vector<8x128xf32> -> vector<8x128xf32>
    %cst_21 = arith.constant dense<0.000000e+00> : vector<128xf32>
    %35 = vector.multi_reduction <add>, %34, %cst_21 [0] : vector<8x128xf32> to vector<128xf32>
    %36 = vector.shape_cast %35 : vector<128xf32> to vector<1x128xf32>
    %cst_22 = arith.constant 8.000000e+00 : f32
    %37 = vector.broadcast %cst_22 : f32 to vector<1x128xf32>
    %38 = arith.divf %36, %37 : vector<1x128xf32>
    %39 = vector.broadcast %38 : vector<1x128xf32> to vector<8x128xf32>
    %40 = arith.subf %34, %39 : vector<8x128xf32>
    %41 = arith.mulf %40, %40 : vector<8x128xf32>
    %cst_23 = arith.constant dense<0.000000e+00> : vector<128xf32>
    %42 = vector.multi_reduction <add>, %41, %cst_23 [0] : vector<8x128xf32> to vector<128xf32>
    %43 = vector.shape_cast %42 : vector<128xf32> to vector<1x128xf32>
    %cst_24 = arith.constant 8.000000e+00 : f32
    %44 = vector.broadcast %cst_24 : f32 to vector<1x128xf32>
    %45 = arith.divf %43, %44 : vector<1x128xf32>
    %c2 = arith.constant 2 : index
    %c0_25 = arith.constant 0 : index
    %46 = vector.load %arg2[%c2, %c0_25] : memref<20x128xf32, #tpu.memory_space<vmem>>, vector<1x128xf32>
    %cst_26 = arith.constant 9.99999974E-6 : f32
    %47 = vector.broadcast %cst_26 : f32 to vector<1x128xf32>
    %48 = arith.addf %45, %47 : vector<1x128xf32>
    %49 = math.rsqrt %48 : vector<1x128xf32>
    %50 = arith.mulf %46, %49 : vector<1x128xf32>
    %c3 = arith.constant 3 : index
    %c0_27 = arith.constant 0 : index
    %51 = vector.load %arg2[%c3, %c0_27] : memref<20x128xf32, #tpu.memory_space<vmem>>, vector<1x128xf32>
    %52 = arith.mulf %38, %50 : vector<1x128xf32>
    %53 = arith.subf %51, %52 : vector<1x128xf32>
    %54 = vector.broadcast %50 : vector<1x128xf32> to vector<8x128xf32>
    %55 = arith.mulf %34, %54 : vector<8x128xf32>
    %56 = vector.broadcast %53 : vector<1x128xf32> to vector<8x128xf32>
    %57 = arith.addf %55, %56 : vector<8x128xf32>
    %cst_28 = arith.constant 0.000000e+00 : f32
    %58 = vector.broadcast %cst_28 : f32 to vector<8x128xf32>
    %59 = arith.maximumf %57, %58 : vector<8x128xf32>
    %c2_29 = arith.constant 2 : index
    %c0_30 = arith.constant 0 : index
    %c0_31 = arith.constant 0 : index
    %60 = vector.load %arg1[%c2_29, %c0_30, %c0_31] : memref<11x128x128xf32, #tpu.memory_space<vmem>>, vector<1x128x128xf32>
    %61 = vector.shape_cast %60 : vector<1x128x128xf32> to vector<128x128xf32>
    %cst_32 = arith.constant dense<0.000000e+00> : vector<8x128xf32>
    %62 = tpu.matmul %59, %61, %cst_32 {dimension_numbers = #tpu.dot_dimension_numbers<[1], [0], [0], [1], [0, 0, 1, 1], [], []>} : vector<8x128xf32>, vector<128x128xf32>, vector<8x128xf32> -> vector<8x128xf32>
    %cst_33 = arith.constant dense<0.000000e+00> : vector<128xf32>
    %63 = vector.multi_reduction <add>, %62, %cst_33 [0] : vector<8x128xf32> to vector<128xf32>
    %64 = vector.shape_cast %63 : vector<128xf32> to vector<1x128xf32>
    %cst_34 = arith.constant 8.000000e+00 : f32
    %65 = vector.broadcast %cst_34 : f32 to vector<1x128xf32>
    %66 = arith.divf %64, %65 : vector<1x128xf32>
    %67 = vector.broadcast %66 : vector<1x128xf32> to vector<8x128xf32>
    %68 = arith.subf %62, %67 : vector<8x128xf32>
    %69 = arith.mulf %68, %68 : vector<8x128xf32>
    %cst_35 = arith.constant dense<0.000000e+00> : vector<128xf32>
    %70 = vector.multi_reduction <add>, %69, %cst_35 [0] : vector<8x128xf32> to vector<128xf32>
    %71 = vector.shape_cast %70 : vector<128xf32> to vector<1x128xf32>
    %cst_36 = arith.constant 8.000000e+00 : f32
    %72 = vector.broadcast %cst_36 : f32 to vector<1x128xf32>
    %73 = arith.divf %71, %72 : vector<1x128xf32>
    %c4 = arith.constant 4 : index
    %c0_37 = arith.constant 0 : index
    %74 = vector.load %arg2[%c4, %c0_37] : memref<20x128xf32, #tpu.memory_space<vmem>>, vector<1x128xf32>
    %cst_38 = arith.constant 9.99999974E-6 : f32
    %75 = vector.broadcast %cst_38 : f32 to vector<1x128xf32>
    %76 = arith.addf %73, %75 : vector<1x128xf32>
    %77 = math.rsqrt %76 : vector<1x128xf32>
    %78 = arith.mulf %74, %77 : vector<1x128xf32>
    %c5 = arith.constant 5 : index
    %c0_39 = arith.constant 0 : index
    %79 = vector.load %arg2[%c5, %c0_39] : memref<20x128xf32, #tpu.memory_space<vmem>>, vector<1x128xf32>
    %80 = arith.mulf %66, %78 : vector<1x128xf32>
    %81 = arith.subf %79, %80 : vector<1x128xf32>
    %82 = vector.broadcast %78 : vector<1x128xf32> to vector<8x128xf32>
    %83 = arith.mulf %62, %82 : vector<8x128xf32>
    %84 = vector.broadcast %81 : vector<1x128xf32> to vector<8x128xf32>
    %85 = arith.addf %83, %84 : vector<8x128xf32>
    %cst_40 = arith.constant 0.000000e+00 : f32
    %86 = vector.broadcast %cst_40 : f32 to vector<8x128xf32>
    %87 = arith.maximumf %85, %86 : vector<8x128xf32>
    %c3_41 = arith.constant 3 : index
    %c0_42 = arith.constant 0 : index
    %c0_43 = arith.constant 0 : index
    %88 = vector.load %arg1[%c3_41, %c0_42, %c0_43] : memref<11x128x128xf32, #tpu.memory_space<vmem>>, vector<1x128x128xf32>
    %89 = vector.shape_cast %88 : vector<1x128x128xf32> to vector<128x128xf32>
    %cst_44 = arith.constant dense<0.000000e+00> : vector<8x128xf32>
    %90 = tpu.matmul %87, %89, %cst_44 {dimension_numbers = #tpu.dot_dimension_numbers<[1], [0], [0], [1], [0, 0, 1, 1], [], []>} : vector<8x128xf32>, vector<128x128xf32>, vector<8x128xf32> -> vector<8x128xf32>
    %cst_45 = arith.constant dense<0.000000e+00> : vector<128xf32>
    %91 = vector.multi_reduction <add>, %90, %cst_45 [0] : vector<8x128xf32> to vector<128xf32>
    %92 = vector.shape_cast %91 : vector<128xf32> to vector<1x128xf32>
    %cst_46 = arith.constant 8.000000e+00 : f32
    %93 = vector.broadcast %cst_46 : f32 to vector<1x128xf32>
    %94 = arith.divf %92, %93 : vector<1x128xf32>
    %95 = vector.broadcast %94 : vector<1x128xf32> to vector<8x128xf32>
    %96 = arith.subf %90, %95 : vector<8x128xf32>
    %97 = arith.mulf %96, %96 : vector<8x128xf32>
    %cst_47 = arith.constant dense<0.000000e+00> : vector<128xf32>
    %98 = vector.multi_reduction <add>, %97, %cst_47 [0] : vector<8x128xf32> to vector<128xf32>
    %99 = vector.shape_cast %98 : vector<128xf32> to vector<1x128xf32>
    %cst_48 = arith.constant 8.000000e+00 : f32
    %100 = vector.broadcast %cst_48 : f32 to vector<1x128xf32>
    %101 = arith.divf %99, %100 : vector<1x128xf32>
    %c6 = arith.constant 6 : index
    %c0_49 = arith.constant 0 : index
    %102 = vector.load %arg2[%c6, %c0_49] : memref<20x128xf32, #tpu.memory_space<vmem>>, vector<1x128xf32>
    %cst_50 = arith.constant 9.99999974E-6 : f32
    %103 = vector.broadcast %cst_50 : f32 to vector<1x128xf32>
    %104 = arith.addf %101, %103 : vector<1x128xf32>
    %105 = math.rsqrt %104 : vector<1x128xf32>
    %106 = arith.mulf %102, %105 : vector<1x128xf32>
    %c7 = arith.constant 7 : index
    %c0_51 = arith.constant 0 : index
    %107 = vector.load %arg2[%c7, %c0_51] : memref<20x128xf32, #tpu.memory_space<vmem>>, vector<1x128xf32>
    %108 = arith.mulf %94, %106 : vector<1x128xf32>
    %109 = arith.subf %107, %108 : vector<1x128xf32>
    %110 = vector.broadcast %106 : vector<1x128xf32> to vector<8x128xf32>
    %111 = arith.mulf %90, %110 : vector<8x128xf32>
    %112 = vector.broadcast %109 : vector<1x128xf32> to vector<8x128xf32>
    %113 = arith.addf %111, %112 : vector<8x128xf32>
    %cst_52 = arith.constant 0.000000e+00 : f32
    %114 = vector.broadcast %cst_52 : f32 to vector<8x128xf32>
    %115 = arith.maximumf %113, %114 : vector<8x128xf32>
    %c4_53 = arith.constant 4 : index
    %c0_54 = arith.constant 0 : index
    %c0_55 = arith.constant 0 : index
    %116 = vector.load %arg1[%c4_53, %c0_54, %c0_55] : memref<11x128x128xf32, #tpu.memory_space<vmem>>, vector<1x128x128xf32>
    %117 = vector.shape_cast %116 : vector<1x128x128xf32> to vector<128x128xf32>
    %cst_56 = arith.constant dense<0.000000e+00> : vector<8x128xf32>
    %118 = tpu.matmul %115, %117, %cst_56 {dimension_numbers = #tpu.dot_dimension_numbers<[1], [0], [0], [1], [0, 0, 1, 1], [], []>} : vector<8x128xf32>, vector<128x128xf32>, vector<8x128xf32> -> vector<8x128xf32>
    %c18 = arith.constant 18 : index
    %c0_57 = arith.constant 0 : index
    %119 = vector.load %arg2[%c18, %c0_57] : memref<20x128xf32, #tpu.memory_space<vmem>>, vector<1x128xf32>
    %120 = vector.broadcast %119 : vector<1x128xf32> to vector<8x128xf32>
    %121 = arith.addf %118, %120 : vector<8x128xf32>
    %c5_58 = arith.constant 5 : index
    %c0_59 = arith.constant 0 : index
    %c0_60 = arith.constant 0 : index
    %122 = vector.load %arg1[%c5_58, %c0_59, %c0_60] : memref<11x128x128xf32, #tpu.memory_space<vmem>>, vector<1x128x128xf32>
    %123 = vector.shape_cast %122 : vector<1x128x128xf32> to vector<128x128xf32>
    %cst_61 = arith.constant dense<0.000000e+00> : vector<8x128xf32>
    %124 = tpu.matmul %115, %123, %cst_61 {dimension_numbers = #tpu.dot_dimension_numbers<[1], [0], [0], [1], [0, 0, 1, 1], [], []>} : vector<8x128xf32>, vector<128x128xf32>, vector<8x128xf32> -> vector<8x128xf32>
    %c19 = arith.constant 19 : index
    %c0_62 = arith.constant 0 : index
    %125 = vector.load %arg2[%c19, %c0_62] : memref<20x128xf32, #tpu.memory_space<vmem>>, vector<1x128xf32>
    %126 = vector.broadcast %125 : vector<1x128xf32> to vector<8x128xf32>
    %127 = arith.addf %124, %126 : vector<8x128xf32>
    %cst_63 = arith.constant 5.000000e-01 : f32
    %128 = vector.broadcast %cst_63 : f32 to vector<8x128xf32>
    %129 = arith.mulf %128, %127 : vector<8x128xf32>
    %130 = math.exp %129 : vector<8x128xf32>
    %131 = arith.mulf %3, %130 : vector<8x128xf32>
    %132 = arith.addf %131, %121 : vector<8x128xf32>
    %c6_64 = arith.constant 6 : index
    %c0_65 = arith.constant 0 : index
    %c0_66 = arith.constant 0 : index
    %133 = vector.load %arg1[%c6_64, %c0_65, %c0_66] : memref<11x128x128xf32, #tpu.memory_space<vmem>>, vector<1x128x128xf32>
    %134 = vector.shape_cast %133 : vector<1x128x128xf32> to vector<128x128xf32>
    %cst_67 = arith.constant dense<0.000000e+00> : vector<8x128xf32>
    %135 = tpu.matmul %132, %134, %cst_67 {dimension_numbers = #tpu.dot_dimension_numbers<[1], [0], [0], [1], [0, 0, 1, 1], [], []>} : vector<8x128xf32>, vector<128x128xf32>, vector<8x128xf32> -> vector<8x128xf32>
    %cst_68 = arith.constant dense<0.000000e+00> : vector<128xf32>
    %136 = vector.multi_reduction <add>, %135, %cst_68 [0] : vector<8x128xf32> to vector<128xf32>
    %137 = vector.shape_cast %136 : vector<128xf32> to vector<1x128xf32>
    %cst_69 = arith.constant 8.000000e+00 : f32
    %138 = vector.broadcast %cst_69 : f32 to vector<1x128xf32>
    %139 = arith.divf %137, %138 : vector<1x128xf32>
    %140 = vector.broadcast %139 : vector<1x128xf32> to vector<8x128xf32>
    %141 = arith.subf %135, %140 : vector<8x128xf32>
    %142 = arith.mulf %141, %141 : vector<8x128xf32>
    %cst_70 = arith.constant dense<0.000000e+00> : vector<128xf32>
    %143 = vector.multi_reduction <add>, %142, %cst_70 [0] : vector<8x128xf32> to vector<128xf32>
    %144 = vector.shape_cast %143 : vector<128xf32> to vector<1x128xf32>
    %cst_71 = arith.constant 8.000000e+00 : f32
    %145 = vector.broadcast %cst_71 : f32 to vector<1x128xf32>
    %146 = arith.divf %144, %145 : vector<1x128xf32>
    %c8 = arith.constant 8 : index
    %c0_72 = arith.constant 0 : index
    %147 = vector.load %arg2[%c8, %c0_72] : memref<20x128xf32, #tpu.memory_space<vmem>>, vector<1x128xf32>
    %cst_73 = arith.constant 9.99999974E-6 : f32
    %148 = vector.broadcast %cst_73 : f32 to vector<1x128xf32>
    %149 = arith.addf %146, %148 : vector<1x128xf32>
    %150 = math.rsqrt %149 : vector<1x128xf32>
    %151 = arith.mulf %147, %150 : vector<1x128xf32>
    %c9 = arith.constant 9 : index
    %c0_74 = arith.constant 0 : index
    %152 = vector.load %arg2[%c9, %c0_74] : memref<20x128xf32, #tpu.memory_space<vmem>>, vector<1x128xf32>
    %153 = arith.mulf %139, %151 : vector<1x128xf32>
    %154 = arith.subf %152, %153 : vector<1x128xf32>
    %155 = vector.broadcast %151 : vector<1x128xf32> to vector<8x128xf32>
    %156 = arith.mulf %135, %155 : vector<8x128xf32>
    %157 = vector.broadcast %154 : vector<1x128xf32> to vector<8x128xf32>
    %158 = arith.addf %156, %157 : vector<8x128xf32>
    %cst_75 = arith.constant 0.000000e+00 : f32
    %159 = vector.broadcast %cst_75 : f32 to vector<8x128xf32>
    %160 = arith.maximumf %158, %159 : vector<8x128xf32>
    %c7_76 = arith.constant 7 : index
    %c0_77 = arith.constant 0 : index
    %c0_78 = arith.constant 0 : index
    %161 = vector.load %arg1[%c7_76, %c0_77, %c0_78] : memref<11x128x128xf32, #tpu.memory_space<vmem>>, vector<1x128x128xf32>
    %162 = vector.shape_cast %161 : vector<1x128x128xf32> to vector<128x128xf32>
    %cst_79 = arith.constant dense<0.000000e+00> : vector<8x128xf32>
    %163 = tpu.matmul %160, %162, %cst_79 {dimension_numbers = #tpu.dot_dimension_numbers<[1], [0], [0], [1], [0, 0, 1, 1], [], []>} : vector<8x128xf32>, vector<128x128xf32>, vector<8x128xf32> -> vector<8x128xf32>
    %cst_80 = arith.constant dense<0.000000e+00> : vector<128xf32>
    %164 = vector.multi_reduction <add>, %163, %cst_80 [0] : vector<8x128xf32> to vector<128xf32>
    %165 = vector.shape_cast %164 : vector<128xf32> to vector<1x128xf32>
    %cst_81 = arith.constant 8.000000e+00 : f32
    %166 = vector.broadcast %cst_81 : f32 to vector<1x128xf32>
    %167 = arith.divf %165, %166 : vector<1x128xf32>
    %168 = vector.broadcast %167 : vector<1x128xf32> to vector<8x128xf32>
    %169 = arith.subf %163, %168 : vector<8x128xf32>
    %170 = arith.mulf %169, %169 : vector<8x128xf32>
    %cst_82 = arith.constant dense<0.000000e+00> : vector<128xf32>
    %171 = vector.multi_reduction <add>, %170, %cst_82 [0] : vector<8x128xf32> to vector<128xf32>
    %172 = vector.shape_cast %171 : vector<128xf32> to vector<1x128xf32>
    %cst_83 = arith.constant 8.000000e+00 : f32
    %173 = vector.broadcast %cst_83 : f32 to vector<1x128xf32>
    %174 = arith.divf %172, %173 : vector<1x128xf32>
    %c10 = arith.constant 10 : index
    %c0_84 = arith.constant 0 : index
    %175 = vector.load %arg2[%c10, %c0_84] : memref<20x128xf32, #tpu.memory_space<vmem>>, vector<1x128xf32>
    %cst_85 = arith.constant 9.99999974E-6 : f32
    %176 = vector.broadcast %cst_85 : f32 to vector<1x128xf32>
    %177 = arith.addf %174, %176 : vector<1x128xf32>
    %178 = math.rsqrt %177 : vector<1x128xf32>
    %179 = arith.mulf %175, %178 : vector<1x128xf32>
    %c11 = arith.constant 11 : index
    %c0_86 = arith.constant 0 : index
    %180 = vector.load %arg2[%c11, %c0_86] : memref<20x128xf32, #tpu.memory_space<vmem>>, vector<1x128xf32>
    %181 = arith.mulf %167, %179 : vector<1x128xf32>
    %182 = arith.subf %180, %181 : vector<1x128xf32>
    %183 = vector.broadcast %179 : vector<1x128xf32> to vector<8x128xf32>
    %184 = arith.mulf %163, %183 : vector<8x128xf32>
    %185 = vector.broadcast %182 : vector<1x128xf32> to vector<8x128xf32>
    %186 = arith.addf %184, %185 : vector<8x128xf32>
    %cst_87 = arith.constant 0.000000e+00 : f32
    %187 = vector.broadcast %cst_87 : f32 to vector<8x128xf32>
    %188 = arith.maximumf %186, %187 : vector<8x128xf32>
    %c8_88 = arith.constant 8 : index
    %c0_89 = arith.constant 0 : index
    %c0_90 = arith.constant 0 : index
    %189 = vector.load %arg1[%c8_88, %c0_89, %c0_90] : memref<11x128x128xf32, #tpu.memory_space<vmem>>, vector<1x128x128xf32>
    %190 = vector.shape_cast %189 : vector<1x128x128xf32> to vector<128x128xf32>
    %cst_91 = arith.constant dense<0.000000e+00> : vector<8x128xf32>
    %191 = tpu.matmul %188, %190, %cst_91 {dimension_numbers = #tpu.dot_dimension_numbers<[1], [0], [0], [1], [0, 0, 1, 1], [], []>} : vector<8x128xf32>, vector<128x128xf32>, vector<8x128xf32> -> vector<8x128xf32>
    %cst_92 = arith.constant dense<0.000000e+00> : vector<128xf32>
    %192 = vector.multi_reduction <add>, %191, %cst_92 [0] : vector<8x128xf32> to vector<128xf32>
    %193 = vector.shape_cast %192 : vector<128xf32> to vector<1x128xf32>
    %cst_93 = arith.constant 8.000000e+00 : f32
    %194 = vector.broadcast %cst_93 : f32 to vector<1x128xf32>
    %195 = arith.divf %193, %194 : vector<1x128xf32>
    %196 = vector.broadcast %195 : vector<1x128xf32> to vector<8x128xf32>
    %197 = arith.subf %191, %196 : vector<8x128xf32>
    %198 = arith.mulf %197, %197 : vector<8x128xf32>
    %cst_94 = arith.constant dense<0.000000e+00> : vector<128xf32>
    %199 = vector.multi_reduction <add>, %198, %cst_94 [0] : vector<8x128xf32> to vector<128xf32>
    %200 = vector.shape_cast %199 : vector<128xf32> to vector<1x128xf32>
    %cst_95 = arith.constant 8.000000e+00 : f32
    %201 = vector.broadcast %cst_95 : f32 to vector<1x128xf32>
    %202 = arith.divf %200, %201 : vector<1x128xf32>
    %c12 = arith.constant 12 : index
    %c0_96 = arith.constant 0 : index
    %203 = vector.load %arg2[%c12, %c0_96] : memref<20x128xf32, #tpu.memory_space<vmem>>, vector<1x128xf32>
    %cst_97 = arith.constant 9.99999974E-6 : f32
    %204 = vector.broadcast %cst_97 : f32 to vector<1x128xf32>
    %205 = arith.addf %202, %204 : vector<1x128xf32>
    %206 = math.rsqrt %205 : vector<1x128xf32>
    %207 = arith.mulf %203, %206 : vector<1x128xf32>
    %c13 = arith.constant 13 : index
    %c0_98 = arith.constant 0 : index
    %208 = vector.load %arg2[%c13, %c0_98] : memref<20x128xf32, #tpu.memory_space<vmem>>, vector<1x128xf32>
    %209 = arith.mulf %195, %207 : vector<1x128xf32>
    %210 = arith.subf %208, %209 : vector<1x128xf32>
    %211 = vector.broadcast %207 : vector<1x128xf32> to vector<8x128xf32>
    %212 = arith.mulf %191, %211 : vector<8x128xf32>
    %213 = vector.broadcast %210 : vector<1x128xf32> to vector<8x128xf32>
    %214 = arith.addf %212, %213 : vector<8x128xf32>
    %cst_99 = arith.constant 0.000000e+00 : f32
    %215 = vector.broadcast %cst_99 : f32 to vector<8x128xf32>
    %216 = arith.maximumf %214, %215 : vector<8x128xf32>
    %c9_100 = arith.constant 9 : index
    %c0_101 = arith.constant 0 : index
    %c0_102 = arith.constant 0 : index
    %217 = vector.load %arg1[%c9_100, %c0_101, %c0_102] : memref<11x128x128xf32, #tpu.memory_space<vmem>>, vector<1x128x128xf32>
    %218 = vector.shape_cast %217 : vector<1x128x128xf32> to vector<128x128xf32>
    %cst_103 = arith.constant dense<0.000000e+00> : vector<8x128xf32>
    %219 = tpu.matmul %216, %218, %cst_103 {dimension_numbers = #tpu.dot_dimension_numbers<[1], [0], [0], [1], [0, 0, 1, 1], [], []>} : vector<8x128xf32>, vector<128x128xf32>, vector<8x128xf32> -> vector<8x128xf32>
    %cst_104 = arith.constant dense<0.000000e+00> : vector<128xf32>
    %220 = vector.multi_reduction <add>, %219, %cst_104 [0] : vector<8x128xf32> to vector<128xf32>
    %221 = vector.shape_cast %220 : vector<128xf32> to vector<1x128xf32>
    %cst_105 = arith.constant 8.000000e+00 : f32
    %222 = vector.broadcast %cst_105 : f32 to vector<1x128xf32>
    %223 = arith.divf %221, %222 : vector<1x128xf32>
    %224 = vector.broadcast %223 : vector<1x128xf32> to vector<8x128xf32>
    %225 = arith.subf %219, %224 : vector<8x128xf32>
    %226 = arith.mulf %225, %225 : vector<8x128xf32>
    %cst_106 = arith.constant dense<0.000000e+00> : vector<128xf32>
    %227 = vector.multi_reduction <add>, %226, %cst_106 [0] : vector<8x128xf32> to vector<128xf32>
    %228 = vector.shape_cast %227 : vector<128xf32> to vector<1x128xf32>
    %cst_107 = arith.constant 8.000000e+00 : f32
    %229 = vector.broadcast %cst_107 : f32 to vector<1x128xf32>
    %230 = arith.divf %228, %229 : vector<1x128xf32>
    %c14 = arith.constant 14 : index
    %c0_108 = arith.constant 0 : index
    %231 = vector.load %arg2[%c14, %c0_108] : memref<20x128xf32, #tpu.memory_space<vmem>>, vector<1x128xf32>
    %cst_109 = arith.constant 9.99999974E-6 : f32
    %232 = vector.broadcast %cst_109 : f32 to vector<1x128xf32>
    %233 = arith.addf %230, %232 : vector<1x128xf32>
    %234 = math.rsqrt %233 : vector<1x128xf32>
    %235 = arith.mulf %231, %234 : vector<1x128xf32>
    %c15 = arith.constant 15 : index
    %c0_110 = arith.constant 0 : index
    %236 = vector.load %arg2[%c15, %c0_110] : memref<20x128xf32, #tpu.memory_space<vmem>>, vector<1x128xf32>
    %237 = arith.mulf %223, %235 : vector<1x128xf32>
    %238 = arith.subf %236, %237 : vector<1x128xf32>
    %239 = vector.broadcast %235 : vector<1x128xf32> to vector<8x128xf32>
    %240 = arith.mulf %219, %239 : vector<8x128xf32>
    %241 = vector.broadcast %238 : vector<1x128xf32> to vector<8x128xf32>
    %242 = arith.addf %240, %241 : vector<8x128xf32>
    %cst_111 = arith.constant 0.000000e+00 : f32
    %243 = vector.broadcast %cst_111 : f32 to vector<8x128xf32>
    %244 = arith.maximumf %242, %243 : vector<8x128xf32>
    %c10_112 = arith.constant 10 : index
    %c0_113 = arith.constant 0 : index
    %c0_114 = arith.constant 0 : index
    %245 = vector.load %arg1[%c10_112, %c0_113, %c0_114] : memref<11x128x128xf32, #tpu.memory_space<vmem>>, vector<1x128x128xf32>
    %246 = vector.shape_cast %245 : vector<1x128x128xf32> to vector<128x128xf32>
    %cst_115 = arith.constant dense<0.000000e+00> : vector<8x128xf32>
    %247 = tpu.matmul %244, %246, %cst_115 {dimension_numbers = #tpu.dot_dimension_numbers<[1], [0], [0], [1], [0, 0, 1, 1], [], []>} : vector<8x128xf32>, vector<128x128xf32>, vector<8x128xf32> -> vector<8x128xf32>
    %cst_116 = arith.constant dense<0.000000e+00> : vector<128xf32>
    %248 = vector.multi_reduction <add>, %247, %cst_116 [0] : vector<8x128xf32> to vector<128xf32>
    %249 = vector.shape_cast %248 : vector<128xf32> to vector<1x128xf32>
    %cst_117 = arith.constant 8.000000e+00 : f32
    %250 = vector.broadcast %cst_117 : f32 to vector<1x128xf32>
    %251 = arith.divf %249, %250 : vector<1x128xf32>
    %252 = vector.broadcast %251 : vector<1x128xf32> to vector<8x128xf32>
    %253 = arith.subf %247, %252 : vector<8x128xf32>
    %254 = arith.mulf %253, %253 : vector<8x128xf32>
    %cst_118 = arith.constant dense<0.000000e+00> : vector<128xf32>
    %255 = vector.multi_reduction <add>, %254, %cst_118 [0] : vector<8x128xf32> to vector<128xf32>
    %256 = vector.shape_cast %255 : vector<128xf32> to vector<1x128xf32>
    %cst_119 = arith.constant 8.000000e+00 : f32
    %257 = vector.broadcast %cst_119 : f32 to vector<1x128xf32>
    %258 = arith.divf %256, %257 : vector<1x128xf32>
    %c16 = arith.constant 16 : index
    %c0_120 = arith.constant 0 : index
    %259 = vector.load %arg2[%c16, %c0_120] : memref<20x128xf32, #tpu.memory_space<vmem>>, vector<1x128xf32>
    %cst_121 = arith.constant 9.99999974E-6 : f32
    %260 = vector.broadcast %cst_121 : f32 to vector<1x128xf32>
    %261 = arith.addf %258, %260 : vector<1x128xf32>
    %262 = math.rsqrt %261 : vector<1x128xf32>
    %263 = arith.mulf %259, %262 : vector<1x128xf32>
    %c17 = arith.constant 17 : index
    %c0_122 = arith.constant 0 : index
    %264 = vector.load %arg2[%c17, %c0_122] : memref<20x128xf32, #tpu.memory_space<vmem>>, vector<1x128xf32>
    %265 = arith.mulf %251, %263 : vector<1x128xf32>
    %266 = arith.subf %264, %265 : vector<1x128xf32>
    %267 = vector.broadcast %263 : vector<1x128xf32> to vector<8x128xf32>
    %268 = arith.mulf %247, %267 : vector<8x128xf32>
    %269 = vector.broadcast %266 : vector<1x128xf32> to vector<8x128xf32>
    %270 = arith.addf %268, %269 : vector<8x128xf32>
    %c0_123 = arith.constant 0 : index
    %c0_124 = arith.constant 0 : index
    %c0_125 = arith.constant 0 : index
    %271 = vector.load %arg3[%c0_123, %c0_124, %c0_125] : memref<3x8x128xf32, #tpu.memory_space<vmem>>, vector<1x8x128xf32>
    %272 = vector.shape_cast %271 : vector<1x8x128xf32> to vector<8x128xf32>
    %273 = vector.shape_cast %270 : vector<8x128xf32> to vector<1x8x128xf32>
    tpu.vector_store %arg3[%c0_123, %c0_124, %c0_125], %273 {strides = array<i32>} : memref<3x8x128xf32, #tpu.memory_space<vmem>>, vector<1x8x128xf32>,
    %c1_126 = arith.constant 1 : index
    %c0_127 = arith.constant 0 : index
    %c0_128 = arith.constant 0 : index
    %274 = vector.load %arg3[%c1_126, %c0_127, %c0_128] : memref<3x8x128xf32, #tpu.memory_space<vmem>>, vector<1x8x128xf32>
    %275 = vector.shape_cast %274 : vector<1x8x128xf32> to vector<8x128xf32>
    %276 = vector.shape_cast %121 : vector<8x128xf32> to vector<1x8x128xf32>
    tpu.vector_store %arg3[%c1_126, %c0_127, %c0_128], %276 {strides = array<i32>} : memref<3x8x128xf32, #tpu.memory_space<vmem>>, vector<1x8x128xf32>,
    %c2_129 = arith.constant 2 : index
    %c0_130 = arith.constant 0 : index
    %c0_131 = arith.constant 0 : index
    %277 = vector.load %arg3[%c2_129, %c0_130, %c0_131] : memref<3x8x128xf32, #tpu.memory_space<vmem>>, vector<1x8x128xf32>
    %278 = vector.shape_cast %277 : vector<1x8x128xf32> to vector<8x128xf32>
    %279 = vector.shape_cast %127 : vector<8x128xf32> to vector<1x8x128xf32>
    tpu.vector_store %arg3[%c2_129, %c0_130, %c0_131], %279 {strides = array<i32>} : memref<3x8x128xf32, #tpu.memory_space<vmem>>, vector<1x8x128xf32>,
    return
  }
}

</mosaic_0001>

<bundles_post_ra>
// kernel: tpu_custom_call.1
= control target key start
LH: loop header
LB: loop body
LE: loop exit
PB: predicated region body
PF: predicated region fallthrough
CT: control target
= control target key end

     0   :  { %8 = vsyncpa [#allocation3], 0  ;;  %s2317_s0 = inlined_call_operand.hbm [shape: f32[2,8,128], index: 0, kind: input, shape index: {}]   ;;  %s2318_s1 = inlined_call_operand.hbm [shape: f32[11,128,128], index: 1, kind: input, shape index: {}]   ;;  %s2319_s2 = inlined_call_operand.hbm [shape: f32[20,128], index: 2, kind: input, shape index: {}]   ;;  %s2320_s3 = inlined_call_operand.hbm [shape: f32[3,8,128], index: 3, kind: output, shape index: {}]  }
   0x1   :  { %9 = vsyncpa [#allocation6], 0 }
   0x2   :  { %10 = vsyncpa [#allocation4], 0  ;;  %s2047_s12 = smov [#allocation5]   ;;  %s2048_s14 = smov [#allocation2]  }
   0x3   :  { %s28_s13 = sshll.u32 %s2047_s12, 4  ;;  %s16_s15 = sshll.u32 %s2048_s14, 4  ;;  %s29_s13 = int_to_ptr.vmem [resolvable:$true] %s28_s13  ;;  %s17_s15 = int_to_ptr.vmem [resolvable:$true] %s16_s15 }
   0x4   :  { %s1969_s16 = scalar_lea.vmem %s29_s13, 22528  ;;  %p1974_p1 = scmp.lt.s32.totalorder %s29_s13, %s29_s13 }
   0x5   :  { %p1970_p0 = scmp.ne.s32.totalorder %s29_s13, %s1969_s16  ;;  %p1975_p2 = scmp.lt.s32.totalorder %s1969_s16, %s1969_s16 }
   0x7   :  { %p1976_p3 = por %p1975_p2, %p1974_p1 }
   0x9   :  { %p1977_p4 = pnand %p1976_p3, %p1970_p0 }
   0xb   :  { %1980 = shalt.err (!%p1977_p4)
}
   0xc   :  { %s2049_s17 = smov 128   ;;  %s2050_s18 = smov 8  }
   0xd   :  { %34 = dma.hbm_to_vmem [thread:$0]  %s2318_s1, 22528, %s29_s13, [#allocation6], %s2049_s17, %s2049_s17, %s2050_s18  }
   0xe   :  { %s1989_s21 = scalar_lea.vmem %s17_s15, 256  ;;  %p1994_p6 = scmp.lt.s32.totalorder %s17_s15, %s17_s15 }
   0xf   :  { %p1990_p5 = scmp.ne.s32.totalorder %s17_s15, %s1989_s21  ;;  %p1995_p7 = scmp.lt.s32.totalorder %s1989_s21, %s1989_s21 }
  0x11   :  { %p1996_p8 = por %p1995_p7, %p1994_p6 }
  0x13   :  { %p1997_p9 = pnand %p1996_p8, %p1990_p5 }
  0x15   :  { %2000 = shalt.err (!%p1997_p9)
}
  0x16   :  { %22 = dma.hbm_to_vmem [thread:$0]  %s2317_s0, 256, %s17_s15, [#allocation3], %s2049_s17, %s2049_s17, %s2050_s18  }
  0x17   :  { %s2051_s24 = smov [#allocation7]  }
  0x18   :  { %s40_s25 = sshll.u32 %s2051_s24, 4  ;;  %s41_s25 = int_to_ptr.vmem [resolvable:$true] %s40_s25 }
  0x19   :  { %s2009_s26 = scalar_lea.vmem %s41_s25, 384  ;;  %p2014_p11 = scmp.lt.s32.totalorder %s41_s25, %s41_s25 }
  0x1a   :  { %p2010_p10 = scmp.ne.s32.totalorder %s41_s25, %s2009_s26  ;;  %p2015_p12 = scmp.lt.s32.totalorder %s2009_s26, %s2009_s26 }
  0x1c   :  { %p2016_p13 = por %p2015_p12, %p2014_p11 }
  0x1e   :  { %p2017_p0 = pnand %p2016_p13, %p2010_p10 }
  0x20   :  { %2020 = shalt.err (!%p2017_p0)
}
  0x21   :  { %46 = dma.hbm_to_vmem [thread:$0]  %s2319_s2, 384, %s41_s25, [#allocation6], %s2049_s17, %s2049_s17, %s2050_s18  }
  0x22   :  { %2041 = dma.done.wait [#allocation3], 256  }
  0x23   :  { %2042 = vsyncadd [#allocation3], 4294967040 }
  0x24   :  { %2043 = dma.done.wait [#allocation6], 22912  }
  0x25   :  { %2044 = vsyncadd [#allocation6], 4294944384  ;;  %v2052_v0 = vmov 0.0   ;;  %vm2053_vm0 = vmmov 0   ;;  %v74_v1 = vld [vmem:[#allocation5 + $0x78] sm:$0xff]  ;;  %v73_v2 = vld [vmem:[#allocation5 + $0x70] sm:$0xff]  ;;  %v169_v53 = vlaneseq }
  0x26   :  { %1548 = vmatprep.subr.mxu0 %v2052_v0  ;;  %1580 = vmatprep.mubr.msk.f32.mxu0 %vm2053_vm0, %v2052_v0  ;;  %v72_v3 = vld [vmem:[#allocation5 + $0x68] sm:$0xff]  ;;  %v71_v4 = vld [vmem:[#allocation5 + $0x60] sm:$0xff]  ;;  %v70_v5 = vld [vmem:[#allocation5 + $0x58] sm:$0xff]  ;;  %s2054_s0 = smov [#allocation8]  }
  0x27   :  { %1583 = vmatprep.subr.mxu1 %v2052_v0  ;;  %1615 = vmatprep.mubr.msk.f32.mxu1 %vm2053_vm0, %v2052_v0  ;;  %v69_v6 = vld [vmem:[#allocation5 + $0x50] sm:$0xff]  ;;  %v68_v7 = vld [vmem:[#allocation5 + $0x48] sm:$0xff]  ;;  %v67_v8 = vld [vmem:[#allocation5 + $0x40] sm:$0xff]  ;;  %v170_v54 = vshrl.u32 %v169_v53, 7  ;;  %s1346_s2 = sshll.u32 %s2054_s0, 4  ;;  %s1347_s2 = int_to_ptr.vmem [resolvable:$true] %s1346_s2 }
  0x28   :  { %1549 = vmatpush3.msra.mxu0 %v74_v1  ;;  %v66_v9 = vld [vmem:[#allocation5 + $0x38] sm:$0xff]  ;;  %v65_v10 = vld [vmem:[#allocation5 + $0x30] sm:$0xff]  ;;  %v64_v11 = vld [vmem:[#allocation5 + $0x28] sm:$0xff]  ;;  %s2021_s28 = scalar_lea.vmem %s1347_s2, 384  ;;  %p2026_p2 = scmp.lt.s32.totalorder %s1347_s2, %s1347_s2 }
  0x29   :  { %1550 = vmatprep.subr.mxu0 %v2052_v0  ;;  %v63_v12 = vld [vmem:[#allocation5 + $0x20] sm:$0xff]  ;;  %v62_v13 = vld [vmem:[#allocation5 + $0x18] sm:$0xff]  ;;  %v61_v14 = vld [vmem:[#allocation5 + $0x10] sm:$0xff]  ;;  %v2133_v56 = vsub.s32 0, %v170_v54  ;;  %p2022_p1 = scmp.ne.s32.totalorder %s1347_s2, %s2021_s28  ;;  %p2027_p3 = scmp.lt.s32.totalorder %s2021_s28, %s2021_s28 }
  0x2a   :  { %1551 = vmatpush3.msra.mxu0 %v73_v2  ;;  %v60_v15 = vld [vmem:[#allocation5 + $0x8] sm:$0xff]  ;;  %v59_v16 = vld [vmem:[#allocation5] sm:$0xff]  ;;  %v56_v17 = vld [vmem:[#allocation2] sm:$0xff] }
  0x2b   :  { %1552 = vmatprep.subr.mxu0 %v2052_v0  ;;  %v196_v18 = vld [vmem:[#allocation5 + $0xf8] sm:$0xff]  ;;  %v195_v19 = vld [vmem:[#allocation5 + $0xf0] sm:$0xff]  ;;  %v194_v20 = vld [vmem:[#allocation5 + $0xe8] sm:$0xff]  ;;  %p2028_p4 = por %p2027_p3, %p2026_p2 }
  0x2c   :  { %1553 = vmatpush3.msra.mxu0 %v72_v3  ;;  %1584 = vmatpush3.msra.mxu1 %v196_v18  ;;  %v193_v21 = vld [vmem:[#allocation5 + $0xe0] sm:$0xff]  ;;  %v192_v22 = vld [vmem:[#allocation5 + $0xd8] sm:$0xff]  ;;  %v191_v23 = vld [vmem:[#allocation5 + $0xd0] sm:$0xff] }
  0x2d   :  { %1554 = vmatprep.subr.mxu0 %v2052_v0  ;;  %1585 = vmatprep.subr.mxu1 %v2052_v0  ;;  %v190_v24 = vld [vmem:[#allocation5 + $0xc8] sm:$0xff]  ;;  %v189_v25 = vld [vmem:[#allocation5 + $0xc0] sm:$0xff]  ;;  %v188_v26 = vld [vmem:[#allocation5 + $0xb8] sm:$0xff]  ;;  %p2029_p5 = pnand %p2028_p4, %p2022_p1 }
  0x2e   :  { %1555 = vmatpush3.msra.mxu0 %v71_v4  ;;  %1586 = vmatpush3.msra.mxu1 %v195_v19  ;;  %v187_v27 = vld [vmem:[#allocation5 + $0xb0] sm:$0xff]  ;;  %v186_v28 = vld [vmem:[#allocation5 + $0xa8] sm:$0xff]  ;;  %v185_v29 = vld [vmem:[#allocation5 + $0xa0] sm:$0xff] }
  0x2f   :  { %1556 = vmatprep.subr.mxu0 %v2052_v0  ;;  %1587 = vmatprep.subr.mxu1 %v2052_v0  ;;  %v184_v30 = vld [vmem:[#allocation5 + $0x98] sm:$0xff]  ;;  %v183_v31 = vld [vmem:[#allocation5 + $0x90] sm:$0xff]  ;;  %v182_v32 = vld [vmem:[#allocation5 + $0x88] sm:$0xff] }
  0x30   :  { %1557 = vmatpush3.msra.mxu0 %v70_v5  ;;  %1588 = vmatpush3.msra.mxu1 %v194_v20  ;;  %v181_v33 = vld [vmem:[#allocation5 + $0x80] sm:$0xff]  ;;  %v317_v4 = vld [vmem:[#allocation5 + $0x178] sm:$0xff]  ;;  %v316_v5 = vld [vmem:[#allocation5 + $0x170] sm:$0xff] }
  0x31   :  { %1558 = vmatprep.subr.mxu0 %v2052_v0  ;;  %1589 = vmatprep.subr.mxu1 %v2052_v0  ;;  %v162_v55 = vld [vmem:[#allocation7] sm:$0x1]  ;;  %v166_v59 = vld [vmem:[#allocation7 + $0x1] sm:$0x1]  ;;  %v303_v18 = vld [vmem:[#allocation5 + $0x108] sm:$0xff] }
  0x32   :  { %1559 = vmatpush3.msra.mxu0 %v69_v6  ;;  %1590 = vmatpush3.msra.mxu1 %v193_v21  ;;  %v315_v6 = vld [vmem:[#allocation5 + $0x168] sm:$0xff]  ;;  %v302_v19 = vld [vmem:[#allocation5 + $0x100] sm:$0xff]  ;;  %v434_v54 = vld [vmem:[#allocation5 + $0x1d8] sm:$0xff] }
  0x33   :  { %1560 = vmatprep.subr.mxu0 %v2052_v0  ;;  %1591 = vmatprep.subr.mxu1 %v2052_v0  ;;  %v435_v53 = vld [vmem:[#allocation5 + $0x1e0] sm:$0xff] }
  0x34   :  { %1561 = vmatpush3.msra.mxu0 %v68_v7  ;;  %1592 = vmatpush3.msra.mxu1 %v192_v22  ;;  %v314_v7 = vld [vmem:[#allocation5 + $0x160] sm:$0xff] }
  0x35   :  { %1562 = vmatprep.subr.mxu0 %v2052_v0  ;;  %1593 = vmatprep.subr.mxu1 %v2052_v0 }
  0x36   :  { %1563 = vmatpush3.msra.mxu0 %v67_v8  ;;  %1594 = vmatpush3.msra.mxu1 %v191_v23  ;;  %v313_v8 = vld [vmem:[#allocation5 + $0x158] sm:$0xff] }
  0x37   :  { %1564 = vmatprep.subr.mxu0 %v2052_v0  ;;  %1595 = vmatprep.subr.mxu1 %v2052_v0 }
  0x38   :  { %1565 = vmatpush3.msra.mxu0 %v66_v9  ;;  %1596 = vmatpush3.msra.mxu1 %v190_v24  ;;  %v312_v9 = vld [vmem:[#allocation5 + $0x150] sm:$0xff] }
  0x39   :  { %1566 = vmatprep.subr.mxu0 %v2052_v0  ;;  %1597 = vmatprep.subr.mxu1 %v2052_v0 }
  0x3a   :  { %1567 = vmatpush3.msra.mxu0 %v65_v10  ;;  %1598 = vmatpush3.msra.mxu1 %v189_v25  ;;  %v311_v10 = vld [vmem:[#allocation5 + $0x148] sm:$0xff] }
  0x3b   :  { %1568 = vmatprep.subr.mxu0 %v2052_v0  ;;  %1599 = vmatprep.subr.mxu1 %v2052_v0 }
  0x3c   :  { %1569 = vmatpush3.msra.mxu0 %v64_v11  ;;  %1600 = vmatpush3.msra.mxu1 %v188_v26  ;;  %v310_v11 = vld [vmem:[#allocation5 + $0x140] sm:$0xff] }
  0x3d   :  { %1570 = vmatprep.subr.mxu0 %v2052_v0  ;;  %1601 = vmatprep.subr.mxu1 %v2052_v0 }
  0x3e   :  { %1571 = vmatpush3.msra.mxu0 %v63_v12  ;;  %1602 = vmatpush3.msra.mxu1 %v187_v27  ;;  %v309_v12 = vld [vmem:[#allocation5 + $0x138] sm:$0xff] }
  0x3f   :  { %1572 = vmatprep.subr.mxu0 %v2052_v0  ;;  %1603 = vmatprep.subr.mxu1 %v2052_v0 }
  0x40   :  { %1573 = vmatpush3.msra.mxu0 %v62_v13  ;;  %1604 = vmatpush3.msra.mxu1 %v186_v28  ;;  %v308_v13 = vld [vmem:[#allocation5 + $0x130] sm:$0xff] }
  0x41   :  { %1574 = vmatprep.subr.mxu0 %v2052_v0  ;;  %1605 = vmatprep.subr.mxu1 %v2052_v0 }
  0x42   :  { %1575 = vmatpush3.msra.mxu0 %v61_v14  ;;  %1606 = vmatpush3.msra.mxu1 %v185_v29  ;;  %v307_v14 = vld [vmem:[#allocation5 + $0x128] sm:$0xff] }
  0x43   :  { %1576 = vmatprep.subr.mxu0 %v2052_v0  ;;  %1607 = vmatprep.subr.mxu1 %v2052_v0 }
  0x44   :  { %1577 = vmatpush3.msra.mxu0 %v60_v15  ;;  %1608 = vmatpush3.msra.mxu1 %v184_v30  ;;  %v306_v15 = vld [vmem:[#allocation5 + $0x120] sm:$0xff] }
  0x45   :  { %1578 = vmatprep.subr.mxu0 %v2052_v0  ;;  %1609 = vmatprep.subr.mxu1 %v2052_v0 }
  0x46   :  { %1579 = vmatpush3.msra.mxu0 %v59_v16  ;;  %1610 = vmatpush3.msra.mxu1 %v183_v31  ;;  %v305_v16 = vld [vmem:[#allocation5 + $0x118] sm:$0xff] }
  0x47   :  { %1581 = vmatmul.mubr.f32.vlgmr.msra.gmra.mxu0 %v56_v17  ;;  %1618 = vmatprep.subr.mxu0 %v2052_v0  ;;  %v304_v17 = vld [vmem:[#allocation5 + $0x110] sm:$0xff] }
  0x48   :  { %1650 = vmatprep.mubr.msk.f32.mxu0 %vm2053_vm0, %v2052_v0  ;;  %1611 = vmatprep.subr.mxu1 %v2052_v0 }
  0x49   :  { %1612 = vmatpush3.msra.mxu1 %v182_v32  ;;  %1619 = vmatpush3.msra.mxu0 %v317_v4 }
  0x4a   :  { %1613 = vmatprep.subr.mxu1 %v2052_v0  ;;  %1620 = vmatprep.subr.mxu0 %v2052_v0 }
  0x4b   :  { %1614 = vmatpush3.msra.mxu1 %v181_v33  ;;  %1621 = vmatpush3.msra.mxu0 %v316_v5 }
  0x4c   :  { %1653 = vmatprep.subr.mxu1 %v2052_v0  ;;  %1622 = vmatprep.subr.mxu0 %v2052_v0 }
  0x4d   :  { %1623 = vmatpush3.msra.mxu0 %v315_v6 }
  0x4e   :  { %1624 = vmatprep.subr.mxu0 %v2052_v0 }
  0x4f   :  { %1625 = vmatpush3.msra.mxu0 %v314_v7 }
  0x50   :  { %1626 = vmatprep.subr.mxu0 %v2052_v0 }
  0x51   :  { %1627 = vmatpush3.msra.mxu0 %v313_v8 }
  0x52   :  { %1628 = vmatprep.subr.mxu0 %v2052_v0 }
  0x53   :  { %1629 = vmatpush3.msra.mxu0 %v312_v9 }
  0x54   :  { %1630 = vmatprep.subr.mxu0 %v2052_v0 }
  0x55   :  { %1631 = vmatpush3.msra.mxu0 %v311_v10 }
  0x56   :  { %1632 = vmatprep.subr.mxu0 %v2052_v0 }
  0x57   :  { %1633 = vmatpush3.msra.mxu0 %v310_v11 }
  0x58   :  { %1634 = vmatprep.subr.mxu0 %v2052_v0 }
  0x59   :  { %1635 = vmatpush3.msra.mxu0 %v309_v12 }
  0x5a   :  { %1636 = vmatprep.subr.mxu0 %v2052_v0 }
  0x5b   :  { %1637 = vmatpush3.msra.mxu0 %v308_v13 }
  0x5c   :  { %1638 = vmatprep.subr.mxu0 %v2052_v0 }
  0x5d   :  { %1639 = vmatpush3.msra.mxu0 %v307_v14 }
  0x5e   :  { %1640 = vmatprep.subr.mxu0 %v2052_v0 }
  0x5f   :  { %1641 = vmatpush3.msra.mxu0 %v306_v15 }
  0x60   :  { %1642 = vmatprep.subr.mxu0 %v2052_v0 }
  0x61   :  { %1643 = vmatpush3.msra.mxu0 %v305_v16 }
  0x62   :  { %1644 = vmatprep.subr.mxu0 %v2052_v0 }
  0x63   :  { %1645 = vmatpush3.msra.mxu0 %v304_v17 }
  0x64   :  { %1646 = vmatprep.subr.mxu0 %v2052_v0 }
  0x65   :  { %1647 = vmatpush3.msra.mxu0 %v303_v18 }
  0x66   :  { %1648 = vmatprep.subr.mxu0 %v2052_v0 }
  0x67   :  { %1649 = vmatpush3.msra.mxu0 %v302_v19 }
  0x68   :  { %1688 = vmatprep.subr.mxu0 %v2052_v0 }
 0x107   :  { %v141_v34 = vpop.f32.mrf.mxu0 }
 0x108   :  { %v145_v35 = vrot.slane %v141_v34, 4 }
 0x109   :  { %v1582_v36 = vpop.f32.mrf.mxu0 }
 0x10a   :  { %v146_v37 = vadd.f32 %v145_v35, %v141_v34 }
 0x10c   :  { %v147_v38 = vrot.slane %v146_v37, 2 }
 0x10e   :  { %v148_v39 = vadd.f32 %v147_v38, %v146_v37 }
 0x110   :  { %v149_v40 = vrot.slane %v148_v39, 1 }
 0x112   :  { %v150_v41 = vadd.f32 %v149_v40, %v148_v39  ;;  %v283_v39 = vld [vmem:[#allocation7 + $0x2] sm:$0x1] }
 0x114   :  { %v152_v42 = vmul.f32 0.125, %v150_v41 }
 0x116   :  { %v153_v43 = vsub.f32 %v141_v34, %v152_v42 }
 0x118   :  { %v154_v44 = vmul.f32 %v153_v43, %v153_v43 }
 0x11a   :  { %v155_v45 = vrot.slane %v154_v44, 4 }
 0x11c   :  { %v156_v46 = vadd.f32 %v155_v45, %v154_v44 }
 0x11e   :  { %v157_v47 = vrot.slane %v156_v46, 2 }
 0x120   :  { %v158_v48 = vadd.f32 %v157_v47, %v156_v46 }
 0x122   :  { %v159_v49 = vrot.slane %v158_v48, 1 }
 0x124   :  { %v160_v50 = vadd.f32 %v159_v49, %v158_v48 }
 0x126   :  { %v161_v51 = vmul.f32 0.125, %v160_v50  ;;  %v438_v50 = vld [vmem:[#allocation5 + $0x1f8] sm:$0xff] }
 0x128   :  { %v163_v52 = vadd.f32 1e-05, %v161_v51  ;;  %v437_v51 = vld [vmem:[#allocation5 + $0x1f0] sm:$0xff] }
 0x12a   :  { %1941 = vrsqrt.f32 %v163_v52  ;;  %v436_v52 = vld [vmem:[#allocation5 + $0x1e8] sm:$0xff] }
 0x137   :  { %v1942_v57 = vpop.eup %1941 }
 0x138   :  { %v165_v58 = vmul.f32 %v1942_v57, %v162_v55  ;;  %v433_v55 = vld [vmem:[#allocation5 + $0x1d0] sm:$0xff]  ;;  %v432_v57 = vld [vmem:[#allocation5 + $0x1c8] sm:$0xff] }
 0x13a   :  { %v167_v60 = vmul.f32 %v165_v58, %v152_v42  ;;  %v172_v61 = vrot.slane %v165_v58, %v2133_v56  ;;  %v287_v42 = vld [vmem:[#allocation7 + $0x3] sm:$0x1] }
 0x13b   :  { %v431_v58 = vld [vmem:[#allocation5 + $0x1c0] sm:$0xff] }
 0x13c   :  { %v168_v62 = vsub.f32 %v166_v59, %v167_v60  ;;  %v173_v63 = vmul.f32 %v172_v61, %v141_v34  ;;  %v430_v59 = vld [vmem:[#allocation5 + $0x1b8] sm:$0xff]  ;;  %v429_v60 = vld [vmem:[#allocation5 + $0x1b0] sm:$0xff]  ;;  %v428_v61 = vld [vmem:[#allocation5 + $0x1a8] sm:$0xff] }
 0x13e   :  { %v177_v1 = vrot.slane %v168_v62, %v2133_v56  ;;  %v427_v62 = vld [vmem:[#allocation5 + $0x1a0] sm:$0xff] }
 0x140   :  { %v178_v2 = vadd.f32 %v177_v1, %v173_v63  ;;  %v426_v63 = vld [vmem:[#allocation5 + $0x198] sm:$0xff]  ;;  %v425_v1 = vld [vmem:[#allocation5 + $0x190] sm:$0xff] }
 0x142   :  { %v179_v3 = vmax.f32 %v178_v2, 0.0  ;;  %v424_v2 = vld [vmem:[#allocation5 + $0x188] sm:$0xff] }
 0x144   :  { %1616 = vmatmul.mubr.f32.vlgmr.msra.gmra.mxu1 %v179_v3  ;;  %v423_v3 = vld [vmem:[#allocation5 + $0x180] sm:$0xff] }
 0x145   :  { %1685 = vmatprep.mubr.msk.f32.mxu1 %vm2053_vm0, %v2052_v0  ;;  %1654 = vmatpush3.msra.mxu1 %v438_v50  ;;  %v551_v50 = vld [vmem:[#allocation5 + $0x238] sm:$0xff] }
 0x146   :  { %1655 = vmatprep.subr.mxu1 %v2052_v0 }
 0x147   :  { %1656 = vmatpush3.msra.mxu1 %v437_v51  ;;  %v643_v51 = vld [vmem:[#allocation5 + $0x2b8] sm:$0xff] }
 0x148   :  { %1657 = vmatprep.subr.mxu1 %v2052_v0 }
 0x149   :  { %1658 = vmatpush3.msra.mxu1 %v436_v52  ;;  %v550_v52 = vld [vmem:[#allocation5 + $0x230] sm:$0xff] }
 0x14a   :  { %1659 = vmatprep.subr.mxu1 %v2052_v0 }
 0x14b   :  { %1660 = vmatpush3.msra.mxu1 %v435_v53  ;;  %v642_v53 = vld [vmem:[#allocation5 + $0x2b0] sm:$0xff] }
 0x14c   :  { %1661 = vmatprep.subr.mxu1 %v2052_v0 }
 0x14d   :  { %1662 = vmatpush3.msra.mxu1 %v434_v54  ;;  %v549_v54 = vld [vmem:[#allocation5 + $0x228] sm:$0xff] }
 0x14e   :  { %1663 = vmatprep.subr.mxu1 %v2052_v0 }
 0x14f   :  { %1664 = vmatpush3.msra.mxu1 %v433_v55  ;;  %v641_v55 = vld [vmem:[#allocation5 + $0x2a8] sm:$0xff] }
 0x150   :  { %1665 = vmatprep.subr.mxu1 %v2052_v0 }
 0x151   :  { %1666 = vmatpush3.msra.mxu1 %v432_v57  ;;  %v548_v57 = vld [vmem:[#allocation5 + $0x220] sm:$0xff] }
 0x152   :  { %1667 = vmatprep.subr.mxu1 %v2052_v0 }
 0x153   :  { %1668 = vmatpush3.msra.mxu1 %v431_v58  ;;  %v640_v58 = vld [vmem:[#allocation5 + $0x2a0] sm:$0xff] }
 0x154   :  { %1669 = vmatprep.subr.mxu1 %v2052_v0 }
 0x155   :  { %1670 = vmatpush3.msra.mxu1 %v430_v59  ;;  %v547_v59 = vld [vmem:[#allocation5 + $0x218] sm:$0xff] }
 0x156   :  { %1671 = vmatprep.subr.mxu1 %v2052_v0 }
 0x157   :  { %1672 = vmatpush3.msra.mxu1 %v429_v60  ;;  %v639_v60 = vld [vmem:[#allocation5 + $0x298] sm:$0xff] }
 0x158   :  { %1673 = vmatprep.subr.mxu1 %v2052_v0 }
 0x159   :  { %1674 = vmatpush3.msra.mxu1 %v428_v61  ;;  %v546_v61 = vld [vmem:[#allocation5 + $0x210] sm:$0xff] }
 0x15a   :  { %1675 = vmatprep.subr.mxu1 %v2052_v0 }
 0x15b   :  { %1676 = vmatpush3.msra.mxu1 %v427_v62  ;;  %v638_v62 = vld [vmem:[#allocation5 + $0x290] sm:$0xff] }
 0x15c   :  { %1677 = vmatprep.subr.mxu1 %v2052_v0 }
 0x15d   :  { %1678 = vmatpush3.msra.mxu1 %v426_v63  ;;  %v545_v63 = vld [vmem:[#allocation5 + $0x208] sm:$0xff] }
 0x15e   :  { %1679 = vmatprep.subr.mxu1 %v2052_v0 }
 0x15f   :  { %1680 = vmatpush3.msra.mxu1 %v425_v1  ;;  %v637_v1 = vld [vmem:[#allocation5 + $0x288] sm:$0xff] }
 0x160   :  { %1681 = vmatprep.subr.mxu1 %v2052_v0 }
 0x161   :  { %1682 = vmatpush3.msra.mxu1 %v424_v2  ;;  %v544_v2 = vld [vmem:[#allocation5 + $0x200] sm:$0xff] }
 0x162   :  { %1683 = vmatprep.subr.mxu1 %v2052_v0 }
 0x163   :  { %1684 = vmatpush3.msra.mxu1 %v423_v3  ;;  %v636_v3 = vld [vmem:[#allocation5 + $0x280] sm:$0xff] }
 0x164   :  { %1723 = vmatprep.subr.mxu1 %v2052_v0 }
 0x204   :  { %v263_v20 = vpop.f32.mrf.mxu1 }
 0x205   :  { %v267_v21 = vrot.slane %v263_v20, 4 }
 0x206   :  { %v1617_v22 = vpop.f32.mrf.mxu1 }
 0x207   :  { %v268_v23 = vadd.f32 %v267_v21, %v263_v20 }
 0x209   :  { %v269_v24 = vrot.slane %v268_v23, 2 }
 0x20b   :  { %v270_v25 = vadd.f32 %v269_v24, %v268_v23  ;;  %v404_v23 = vld [vmem:[#allocation7 + $0x4] sm:$0x1] }
 0x20d   :  { %v271_v26 = vrot.slane %v270_v25, 1 }
 0x20f   :  { %v272_v27 = vadd.f32 %v271_v26, %v270_v25  ;;  %v408_v26 = vld [vmem:[#allocation7 + $0x5] sm:$0x1] }
 0x211   :  { %v273_v28 = vmul.f32 0.125, %v272_v27 }
 0x213   :  { %v274_v29 = vsub.f32 %v263_v20, %v273_v28 }
 0x215   :  { %v275_v30 = vmul.f32 %v274_v29, %v274_v29 }
 0x217   :  { %v276_v31 = vrot.slane %v275_v30, 4 }
 0x219   :  { %v277_v32 = vadd.f32 %v276_v31, %v275_v30 }
 0x21b   :  { %v278_v33 = vrot.slane %v277_v32, 2 }
 0x21d   :  { %v279_v34 = vadd.f32 %v278_v33, %v277_v32 }
 0x21f   :  { %v280_v35 = vrot.slane %v279_v34, 1 }
 0x221   :  { %v281_v36 = vadd.f32 %v280_v35, %v279_v34  ;;  %v559_v34 = vld [vmem:[#allocation5 + $0x278] sm:$0xff] }
 0x222   :  { %v651_v35 = vld [vmem:[#allocation5 + $0x2f8] sm:$0xff] }
 0x223   :  { %v282_v37 = vmul.f32 0.125, %v281_v36  ;;  %v558_v36 = vld [vmem:[#allocation5 + $0x270] sm:$0xff] }
 0x225   :  { %v284_v38 = vadd.f32 1e-05, %v282_v37  ;;  %v650_v37 = vld [vmem:[#allocation5 + $0x2f0] sm:$0xff] }
 0x227   :  { %1943 = vrsqrt.f32 %v284_v38  ;;  %v557_v38 = vld [vmem:[#allocation5 + $0x268] sm:$0xff] }
 0x234   :  { %v1944_v40 = vpop.eup %1943 }
 0x235   :  { %v286_v41 = vmul.f32 %v1944_v40, %v283_v39  ;;  %v649_v39 = vld [vmem:[#allocation5 + $0x2e8] sm:$0xff]  ;;  %v556_v40 = vld [vmem:[#allocation5 + $0x260] sm:$0xff] }
 0x237   :  { %v288_v43 = vmul.f32 %v286_v41, %v273_v28  ;;  %v293_v44 = vrot.slane %v286_v41, %v2133_v56  ;;  %v648_v41 = vld [vmem:[#allocation5 + $0x2e0] sm:$0xff] }
 0x239   :  { %v289_v45 = vsub.f32 %v287_v42, %v288_v43  ;;  %v294_v46 = vmul.f32 %v293_v44, %v263_v20  ;;  %v555_v42 = vld [vmem:[#allocation5 + $0x258] sm:$0xff]  ;;  %v554_v44 = vld [vmem:[#allocation5 + $0x250] sm:$0xff] }
 0x23a   :  { %v647_v43 = vld [vmem:[#allocation5 + $0x2d8] sm:$0xff] }
 0x23b   :  { %v298_v47 = vrot.slane %v289_v45, %v2133_v56  ;;  %v646_v45 = vld [vmem:[#allocation5 + $0x2d0] sm:$0xff] }
 0x23d   :  { %v299_v48 = vadd.f32 %v298_v47, %v294_v46  ;;  %v553_v46 = vld [vmem:[#allocation5 + $0x248] sm:$0xff] }
 0x23e   :  { %v645_v47 = vld [vmem:[#allocation5 + $0x2c8] sm:$0xff] }
 0x23f   :  { %v300_v49 = vmax.f32 %v299_v48, 0.0  ;;  %v552_v48 = vld [vmem:[#allocation5 + $0x240] sm:$0xff] }
 0x241   :  { %1651 = vmatmul.mubr.f32.vlgmr.msra.gmra.mxu0 %v300_v49  ;;  %v644_v49 = vld [vmem:[#allocation5 + $0x2c0] sm:$0xff] }
 0x242   :  { %1720 = vmatprep.mubr.msk.f32.mxu0 %vm2053_vm0, %v2052_v0  ;;  %1689 = vmatpush3.msra.mxu0 %v559_v34  ;;  %v748_v34 = vld [vmem:[#allocation5 + $0x378] sm:$0xff] }
 0x243   :  { %1690 = vmatprep.subr.mxu0 %v2052_v0 }
 0x244   :  { %1691 = vmatpush3.msra.mxu0 %v558_v36  ;;  %v746_v36 = vld [vmem:[#allocation5 + $0x368] sm:$0xff] }
 0x245   :  { %1692 = vmatprep.subr.mxu0 %v2052_v0 }
 0x246   :  { %1693 = vmatpush3.msra.mxu0 %v557_v38  ;;  %v744_v38 = vld [vmem:[#allocation5 + $0x358] sm:$0xff] }
 0x247   :  { %1694 = vmatprep.subr.mxu0 %v2052_v0 }
 0x248   :  { %1695 = vmatpush3.msra.mxu0 %v556_v40  ;;  %v742_v40 = vld [vmem:[#allocation5 + $0x348] sm:$0xff] }
 0x249   :  { %1696 = vmatprep.subr.mxu0 %v2052_v0 }
 0x24a   :  { %1697 = vmatpush3.msra.mxu0 %v555_v42  ;;  %v740_v42 = vld [vmem:[#allocation5 + $0x338] sm:$0xff] }
 0x24b   :  { %1698 = vmatprep.subr.mxu0 %v2052_v0 }
 0x24c   :  { %1699 = vmatpush3.msra.mxu0 %v554_v44  ;;  %v738_v44 = vld [vmem:[#allocation5 + $0x328] sm:$0xff] }
 0x24d   :  { %1700 = vmatprep.subr.mxu0 %v2052_v0 }
 0x24e   :  { %1701 = vmatpush3.msra.mxu0 %v553_v46  ;;  %v736_v46 = vld [vmem:[#allocation5 + $0x318] sm:$0xff] }
 0x24f   :  { %1702 = vmatprep.subr.mxu0 %v2052_v0 }
 0x250   :  { %1703 = vmatpush3.msra.mxu0 %v552_v48  ;;  %v734_v48 = vld [vmem:[#allocation5 + $0x308] sm:$0xff] }
 0x251   :  { %1704 = vmatprep.subr.mxu0 %v2052_v0 }
 0x252   :  { %1705 = vmatpush3.msra.mxu0 %v551_v50  ;;  %v1359_v50 = vld [vmem:[#allocation7 + $0x12] ss:$0 sm:$0xff] }
 0x253   :  { %1706 = vmatprep.subr.mxu0 %v2052_v0 }
 0x254   :  { %1707 = vmatpush3.msra.mxu0 %v550_v52 }
 0x255   :  { %1708 = vmatprep.subr.mxu0 %v2052_v0 }
 0x256   :  { %1709 = vmatpush3.msra.mxu0 %v549_v54 }
 0x257   :  { %1710 = vmatprep.subr.mxu0 %v2052_v0 }
 0x258   :  { %1711 = vmatpush3.msra.mxu0 %v548_v57 }
 0x259   :  { %1712 = vmatprep.subr.mxu0 %v2052_v0 }
 0x25a   :  { %1713 = vmatpush3.msra.mxu0 %v547_v59 }
 0x25b   :  { %1714 = vmatprep.subr.mxu0 %v2052_v0 }
 0x25c   :  { %1715 = vmatpush3.msra.mxu0 %v546_v61  ;;  %v58_v61 = vld [vmem:[#allocation2 + $0x8] sm:$0xff] }
 0x25d   :  { %1716 = vmatprep.subr.mxu0 %v2052_v0 }
 0x25e   :  { %1717 = vmatpush3.msra.mxu0 %v545_v63 }
 0x25f   :  { %1718 = vmatprep.subr.mxu0 %v2052_v0 }
 0x260   :  { %1719 = vmatpush3.msra.mxu0 %v544_v2  ;;  %v869_v2 = vld [vmem:[#allocation5 + $0x3f8] sm:$0xff] }
 0x261   :  { %1758 = vmatprep.subr.mxu0 %v2052_v0 }
 0x301   :  { %v384_v4 = vpop.f32.mrf.mxu0 }
 0x302   :  { %v388_v5 = vrot.slane %v384_v4, 4 }
 0x303   :  { %v1652_v6 = vpop.f32.mrf.mxu0 }
 0x304   :  { %v389_v7 = vadd.f32 %v388_v5, %v384_v4 }
 0x306   :  { %v390_v8 = vrot.slane %v389_v7, 2 }
 0x308   :  { %v391_v9 = vadd.f32 %v390_v8, %v389_v7 }
 0x30a   :  { %v392_v10 = vrot.slane %v391_v9, 1 }
 0x30c   :  { %v393_v11 = vadd.f32 %v392_v10, %v391_v9 }
 0x30e   :  { %v394_v12 = vmul.f32 0.125, %v393_v11 }
 0x310   :  { %v395_v13 = vsub.f32 %v384_v4, %v394_v12 }
 0x312   :  { %v396_v14 = vmul.f32 %v395_v13, %v395_v13 }
 0x314   :  { %v397_v15 = vrot.slane %v396_v14, 4 }
 0x316   :  { %v398_v16 = vadd.f32 %v397_v15, %v396_v14 }
 0x318   :  { %v399_v17 = vrot.slane %v398_v16, 2 }
 0x31a   :  { %v400_v18 = vadd.f32 %v399_v17, %v398_v16 }
 0x31c   :  { %v401_v19 = vrot.slane %v400_v18, 1 }
 0x31e   :  { %v402_v20 = vadd.f32 %v401_v19, %v400_v18 }
 0x320   :  { %v403_v21 = vmul.f32 0.125, %v402_v20 }
 0x322   :  { %v405_v22 = vadd.f32 1e-05, %v403_v21 }
 0x324   :  { %1945 = vrsqrt.f32 %v405_v22 }
 0x331   :  { %v1946_v24 = vpop.eup %1945 }
 0x332   :  { %v407_v25 = vmul.f32 %v1946_v24, %v404_v23  ;;  %v525_v23 = vld [vmem:[#allocation7 + $0x6] sm:$0x1] }
 0x334   :  { %v409_v27 = vmul.f32 %v407_v25, %v394_v12  ;;  %v414_v28 = vrot.slane %v407_v25, %v2133_v56 }
 0x336   :  { %v410_v29 = vsub.f32 %v408_v26, %v409_v27  ;;  %v415_v30 = vmul.f32 %v414_v28, %v384_v4  ;;  %v529_v26 = vld [vmem:[#allocation7 + $0x7] sm:$0x1] }
 0x338   :  { %v419_v31 = vrot.slane %v410_v29, %v2133_v56 }
 0x33a   :  { %v420_v32 = vadd.f32 %v419_v31, %v415_v30 }
 0x33c   :  { %v421_v33 = vmax.f32 %v420_v32, 0.0 }
 0x33e   :  { %1686 = vmatmul.mubr.f32.vlgmr.msra.gmra.mxu1 %v421_v33 }
 0x33f   :  { %1755 = vmatprep.mubr.msk.f32.mxu1 %vm2053_vm0, %v2052_v0  ;;  %1724 = vmatpush3.msra.mxu1 %v651_v35  ;;  %v747_v35 = vld [vmem:[#allocation5 + $0x370] sm:$0xff] }
 0x340   :  { %1725 = vmatprep.subr.mxu1 %v2052_v0 }
 0x341   :  { %1726 = vmatpush3.msra.mxu1 %v650_v37  ;;  %v745_v37 = vld [vmem:[#allocation5 + $0x360] sm:$0xff] }
 0x342   :  { %1727 = vmatprep.subr.mxu1 %v2052_v0 }
 0x343   :  { %1728 = vmatpush3.msra.mxu1 %v649_v39  ;;  %v743_v39 = vld [vmem:[#allocation5 + $0x350] sm:$0xff] }
 0x344   :  { %1729 = vmatprep.subr.mxu1 %v2052_v0 }
 0x345   :  { %1730 = vmatpush3.msra.mxu1 %v648_v41  ;;  %v741_v41 = vld [vmem:[#allocation5 + $0x340] sm:$0xff] }
 0x346   :  { %1731 = vmatprep.subr.mxu1 %v2052_v0 }
 0x347   :  { %1732 = vmatpush3.msra.mxu1 %v647_v43  ;;  %v739_v43 = vld [vmem:[#allocation5 + $0x330] sm:$0xff] }
 0x348   :  { %1733 = vmatprep.subr.mxu1 %v2052_v0 }
 0x349   :  { %1734 = vmatpush3.msra.mxu1 %v646_v45  ;;  %v737_v45 = vld [vmem:[#allocation5 + $0x320] sm:$0xff] }
 0x34a   :  { %1735 = vmatprep.subr.mxu1 %v2052_v0 }
 0x34b   :  { %1736 = vmatpush3.msra.mxu1 %v645_v47  ;;  %v735_v47 = vld [vmem:[#allocation5 + $0x310] sm:$0xff] }
 0x34c   :  { %1737 = vmatprep.subr.mxu1 %v2052_v0 }
 0x34d   :  { %1738 = vmatpush3.msra.mxu1 %v644_v49  ;;  %v733_v49 = vld [vmem:[#allocation5 + $0x300] sm:$0xff] }
 0x34e   :  { %1739 = vmatprep.subr.mxu1 %v2052_v0 }
 0x34f   :  { %1740 = vmatpush3.msra.mxu1 %v643_v51  ;;  %v1360_v51 = vld [vmem:[#allocation7 + $0x13] ss:$0 sm:$0xff] }
 0x350   :  { %1741 = vmatprep.subr.mxu1 %v2052_v0 }
 0x351   :  { %1742 = vmatpush3.msra.mxu1 %v642_v53 }
 0x352   :  { %1743 = vmatprep.subr.mxu1 %v2052_v0 }
 0x353   :  { %1744 = vmatpush3.msra.mxu1 %v641_v55 }
 0x354   :  { %1745 = vmatprep.subr.mxu1 %v2052_v0 }
 0x355   :  { %1746 = vmatpush3.msra.mxu1 %v640_v58 }
 0x356   :  { %1747 = vmatprep.subr.mxu1 %v2052_v0 }
 0x357   :  { %1748 = vmatpush3.msra.mxu1 %v639_v60 }
 0x358   :  { %1749 = vmatprep.subr.mxu1 %v2052_v0 }
 0x359   :  { %1750 = vmatpush3.msra.mxu1 %v638_v62 }
 0x35a   :  { %1751 = vmatprep.subr.mxu1 %v2052_v0 }
 0x35b   :  { %1752 = vmatpush3.msra.mxu1 %v637_v1 }
 0x35c   :  { %1753 = vmatprep.subr.mxu1 %v2052_v0 }
 0x35d   :  { %1754 = vmatpush3.msra.mxu1 %v636_v3  ;;  %v868_v3 = vld [vmem:[#allocation5 + $0x3f0] sm:$0xff] }
 0x35e   :  { %1793 = vmatprep.subr.mxu1 %v2052_v0 }
 0x3fe   :  { %v505_v4 = vpop.f32.mrf.mxu1 }
 0x3ff   :  { %v509_v5 = vrot.slane %v505_v4, 4 }
 0x400   :  { %v1687_v6 = vpop.f32.mrf.mxu1 }
 0x401   :  { %v510_v7 = vadd.f32 %v509_v5, %v505_v4  ;;  %v866_v5 = vld [vmem:[#allocation5 + $0x3e0] sm:$0xff]  ;;  %v865_v6 = vld [vmem:[#allocation5 + $0x3d8] sm:$0xff] }
 0x403   :  { %v511_v8 = vrot.slane %v510_v7, 2 }
 0x405   :  { %v512_v9 = vadd.f32 %v511_v8, %v510_v7  ;;  %v864_v7 = vld [vmem:[#allocation5 + $0x3d0] sm:$0xff]  ;;  %v863_v8 = vld [vmem:[#allocation5 + $0x3c8] sm:$0xff] }
 0x407   :  { %v513_v10 = vrot.slane %v512_v9, 1 }
 0x409   :  { %v514_v11 = vadd.f32 %v513_v10, %v512_v9  ;;  %v862_v9 = vld [vmem:[#allocation5 + $0x3c0] sm:$0xff]  ;;  %v861_v10 = vld [vmem:[#allocation5 + $0x3b8] sm:$0xff] }
 0x40b   :  { %v515_v12 = vmul.f32 0.125, %v514_v11  ;;  %v860_v11 = vld [vmem:[#allocation5 + $0x3b0] sm:$0xff] }
 0x40d   :  { %v516_v13 = vsub.f32 %v505_v4, %v515_v12 }
 0x40f   :  { %v517_v14 = vmul.f32 %v516_v13, %v516_v13  ;;  %v858_v13 = vld [vmem:[#allocation5 + $0x3a0] sm:$0xff] }
 0x411   :  { %v518_v15 = vrot.slane %v517_v14, 4 }
 0x413   :  { %v519_v16 = vadd.f32 %v518_v15, %v517_v14  ;;  %v857_v14 = vld [vmem:[#allocation5 + $0x398] sm:$0xff]  ;;  %v856_v15 = vld [vmem:[#allocation5 + $0x390] sm:$0xff] }
 0x415   :  { %v520_v17 = vrot.slane %v519_v16, 2 }
 0x417   :  { %v521_v18 = vadd.f32 %v520_v17, %v519_v16  ;;  %v855_v16 = vld [vmem:[#allocation5 + $0x388] sm:$0xff]  ;;  %v854_v17 = vld [vmem:[#allocation5 + $0x380] sm:$0xff] }
 0x419   :  { %v522_v19 = vrot.slane %v521_v18, 1 }
 0x41b   :  { %v523_v20 = vadd.f32 %v522_v19, %v521_v18 }
 0x41d   :  { %v524_v21 = vmul.f32 0.125, %v523_v20 }
 0x41f   :  { %v526_v22 = vadd.f32 1e-05, %v524_v21 }
 0x421   :  { %1947 = vrsqrt.f32 %v526_v22 }
 0x42e   :  { %v1948_v24 = vpop.eup %1947 }
 0x42f   :  { %v528_v25 = vmul.f32 %v1948_v24, %v525_v23 }
 0x431   :  { %v530_v27 = vmul.f32 %v528_v25, %v515_v12  ;;  %v535_v28 = vrot.slane %v528_v25, %v2133_v56  ;;  %v859_v12 = vld [vmem:[#allocation5 + $0x3a8] sm:$0xff] }
 0x433   :  { %v531_v29 = vsub.f32 %v529_v26, %v530_v27  ;;  %v536_v30 = vmul.f32 %v535_v28, %v505_v4  ;;  %v867_v4 = vld [vmem:[#allocation5 + $0x3e8] sm:$0xff] }
 0x435   :  { %v540_v31 = vrot.slane %v531_v29, %v2133_v56 }
 0x437   :  { %v541_v32 = vadd.f32 %v540_v31, %v536_v30 }
 0x439   :  { %v542_v33 = vmax.f32 %v541_v32, 0.0 }
 0x43b   :  { %1721 = vmatmul.mubr.f32.vlgmr.msra.gmra.mxu0 %v542_v33  ;;  %1756 = vmatmul.mubr.f32.vlgmr.msra.gmra.mxu1 %v542_v33 }
 0x43c   :  { %1759 = vmatpush3.msra.mxu0 %v748_v34  ;;  %1790 = vmatprep.mubr.msk.f32.mxu0 %vm2053_vm0, %v2052_v0 }
 0x43d   :  { %1760 = vmatprep.subr.mxu0 %v2052_v0  ;;  %1825 = vmatprep.mubr.msk.f32.mxu1 %vm2053_vm0, %v2052_v0 }
 0x43e   :  { %1761 = vmatpush3.msra.mxu0 %v747_v35  ;;  %1794 = vmatpush3.msra.mxu1 %v869_v2 }
 0x43f   :  { %1762 = vmatprep.subr.mxu0 %v2052_v0  ;;  %1795 = vmatprep.subr.mxu1 %v2052_v0 }
 0x440   :  { %1763 = vmatpush3.msra.mxu0 %v746_v36  ;;  %1796 = vmatpush3.msra.mxu1 %v868_v3 }
 0x441   :  { %1764 = vmatprep.subr.mxu0 %v2052_v0  ;;  %1797 = vmatprep.subr.mxu1 %v2052_v0 }
 0x442   :  { %1765 = vmatpush3.msra.mxu0 %v745_v37  ;;  %1798 = vmatpush3.msra.mxu1 %v867_v4  ;;  %v835_v37 = vld [vmem:[#allocation7 + $0x8] sm:$0x1] }
 0x443   :  { %1766 = vmatprep.subr.mxu0 %v2052_v0  ;;  %1799 = vmatprep.subr.mxu1 %v2052_v0 }
 0x444   :  { %1767 = vmatpush3.msra.mxu0 %v744_v38  ;;  %1800 = vmatpush3.msra.mxu1 %v866_v5 }
 0x445   :  { %1768 = vmatprep.subr.mxu0 %v2052_v0  ;;  %1801 = vmatprep.subr.mxu1 %v2052_v0 }
 0x446   :  { %1769 = vmatpush3.msra.mxu0 %v743_v39  ;;  %1802 = vmatpush3.msra.mxu1 %v865_v6 }
 0x447   :  { %1770 = vmatprep.subr.mxu0 %v2052_v0  ;;  %1803 = vmatprep.subr.mxu1 %v2052_v0 }
 0x448   :  { %1771 = vmatpush3.msra.mxu0 %v742_v40  ;;  %1804 = vmatpush3.msra.mxu1 %v864_v7  ;;  %v839_v40 = vld [vmem:[#allocation7 + $0x9] sm:$0x1] }
 0x449   :  { %1772 = vmatprep.subr.mxu0 %v2052_v0  ;;  %1805 = vmatprep.subr.mxu1 %v2052_v0 }
 0x44a   :  { %1773 = vmatpush3.msra.mxu0 %v741_v41  ;;  %1806 = vmatpush3.msra.mxu1 %v863_v8 }
 0x44b   :  { %1774 = vmatprep.subr.mxu0 %v2052_v0  ;;  %1807 = vmatprep.subr.mxu1 %v2052_v0 }
 0x44c   :  { %1775 = vmatpush3.msra.mxu0 %v740_v42  ;;  %1808 = vmatpush3.msra.mxu1 %v862_v9 }
 0x44d   :  { %1776 = vmatprep.subr.mxu0 %v2052_v0  ;;  %1809 = vmatprep.subr.mxu1 %v2052_v0 }
 0x44e   :  { %1777 = vmatpush3.msra.mxu0 %v739_v43  ;;  %1810 = vmatpush3.msra.mxu1 %v861_v10 }
 0x44f   :  { %1778 = vmatprep.subr.mxu0 %v2052_v0  ;;  %1811 = vmatprep.subr.mxu1 %v2052_v0 }
 0x450   :  { %1779 = vmatpush3.msra.mxu0 %v738_v44  ;;  %1812 = vmatpush3.msra.mxu1 %v860_v11 }
 0x451   :  { %1780 = vmatprep.subr.mxu0 %v2052_v0  ;;  %1813 = vmatprep.subr.mxu1 %v2052_v0 }
 0x452   :  { %1781 = vmatpush3.msra.mxu0 %v737_v45  ;;  %1814 = vmatpush3.msra.mxu1 %v859_v12 }
 0x453   :  { %1782 = vmatprep.subr.mxu0 %v2052_v0  ;;  %1815 = vmatprep.subr.mxu1 %v2052_v0 }
 0x454   :  { %1783 = vmatpush3.msra.mxu0 %v736_v46  ;;  %1816 = vmatpush3.msra.mxu1 %v858_v13 }
 0x455   :  { %1784 = vmatprep.subr.mxu0 %v2052_v0  ;;  %1817 = vmatprep.subr.mxu1 %v2052_v0 }
 0x456   :  { %1785 = vmatpush3.msra.mxu0 %v735_v47  ;;  %1818 = vmatpush3.msra.mxu1 %v857_v14 }
 0x457   :  { %1786 = vmatprep.subr.mxu0 %v2052_v0  ;;  %1819 = vmatprep.subr.mxu1 %v2052_v0 }
 0x458   :  { %1787 = vmatpush3.msra.mxu0 %v734_v48  ;;  %1820 = vmatpush3.msra.mxu1 %v856_v15  ;;  %v990_v48 = vld [vmem:[#allocation5 + $0x478] sm:$0xff] }
 0x459   :  { %1788 = vmatprep.subr.mxu0 %v2052_v0  ;;  %1821 = vmatprep.subr.mxu1 %v2052_v0 }
 0x45a   :  { %1789 = vmatpush3.msra.mxu0 %v733_v49  ;;  %1822 = vmatpush3.msra.mxu1 %v855_v16  ;;  %v989_v49 = vld [vmem:[#allocation5 + $0x470] sm:$0xff] }
 0x45b   :  { %1828 = vmatprep.subr.mxu0 %v2052_v0  ;;  %1823 = vmatprep.subr.mxu1 %v2052_v0 }
 0x45c   :  { %1824 = vmatpush3.msra.mxu1 %v854_v17 }
 0x45d   :  { %1863 = vmatprep.subr.mxu1 %v2052_v0 }
 0x4fb   :  { %v631_v52 = vpop.f32.mrf.mxu0  ;;  %v723_v53 = vpop.f32.mrf.mxu1 }
 0x4fc   :  { %v632_v54 = vadd.f32 %v1359_v50, %v631_v52  ;;  %v724_v55 = vadd.f32 %v1360_v51, %v723_v53  ;;  %v988_v50 = vld [vmem:[#allocation5 + $0x468] sm:$0xff]  ;;  %v987_v51 = vld [vmem:[#allocation5 + $0x460] sm:$0xff]  ;;  %v986_v52 = vld [vmem:[#allocation5 + $0x458] sm:$0xff] }
 0x4fd   :  { %v1722_v57 = vpop.f32.mrf.mxu0  ;;  %v1757_v58 = vpop.f32.mrf.mxu1  ;;  %v985_v53 = vld [vmem:[#allocation5 + $0x450] sm:$0xff] }
 0x4fe   :  { %1338 = vst [vmem:[#allocation8 + $0x8] sm:$0xff] %v632_v54  ;;  %v727_v59 = vmul.f32 0.5, %v724_v55  ;;  %1340 = vst [vmem:[#allocation8 + $0x10] sm:$0xff] %v724_v55  ;;  %v983_v55 = vld [vmem:[#allocation5 + $0x440] sm:$0xff]  ;;  %v982_v57 = vld [vmem:[#allocation5 + $0x438] sm:$0xff] }
 0x4ff   :  { %v981_v58 = vld [vmem:[#allocation5 + $0x430] sm:$0xff] }
 0x500   :  { %v728_v60 = vmul.f32 1.442695, %v727_v59  ;;  %v980_v59 = vld [vmem:[#allocation5 + $0x428] sm:$0xff] }
 0x502   :  { %1949 = vpow2.f32 %v728_v60  ;;  %v979_v60 = vld [vmem:[#allocation5 + $0x420] sm:$0xff] }
 0x50f   :  { %v1950_v62 = vpop.eup %1949 }
 0x510   :  { %v730_v63 = vmul.f32 %v1950_v62, %v58_v61  ;;  %v978_v61 = vld [vmem:[#allocation5 + $0x418] sm:$0xff]  ;;  %v977_v62 = vld [vmem:[#allocation5 + $0x410] sm:$0xff] }
 0x512   :  { %v731_v1 = vadd.f32 %v730_v63, %v632_v54  ;;  %v984_v54 = vld [vmem:[#allocation5 + $0x448] sm:$0xff] }
 0x513   :  { %v976_v63 = vld [vmem:[#allocation5 + $0x408] sm:$0xff] }
 0x514   :  { %1791 = vmatmul.mubr.f32.vlgmr.msra.gmra.mxu0 %v731_v1  ;;  %v975_v1 = vld [vmem:[#allocation5 + $0x400] sm:$0xff] }
 0x515   :  { %1860 = vmatprep.mubr.msk.f32.mxu0 %vm2053_vm0, %v2052_v0  ;;  %1829 = vmatpush3.msra.mxu0 %v990_v48 }
 0x516   :  { %1830 = vmatprep.subr.mxu0 %v2052_v0 }
 0x517   :  { %1831 = vmatpush3.msra.mxu0 %v989_v49 }
 0x518   :  { %1832 = vmatprep.subr.mxu0 %v2052_v0 }
 0x519   :  { %1833 = vmatpush3.msra.mxu0 %v988_v50 }
 0x51a   :  { %1834 = vmatprep.subr.mxu0 %v2052_v0 }
 0x51b   :  { %1835 = vmatpush3.msra.mxu0 %v987_v51 }
 0x51c   :  { %1836 = vmatprep.subr.mxu0 %v2052_v0 }
 0x51d   :  { %1837 = vmatpush3.msra.mxu0 %v986_v52 }
 0x51e   :  { %1838 = vmatprep.subr.mxu0 %v2052_v0 }
 0x51f   :  { %1839 = vmatpush3.msra.mxu0 %v985_v53 }
 0x520   :  { %1840 = vmatprep.subr.mxu0 %v2052_v0 }
 0x521   :  { %1841 = vmatpush3.msra.mxu0 %v984_v54 }
 0x522   :  { %1842 = vmatprep.subr.mxu0 %v2052_v0 }
 0x523   :  { %1843 = vmatpush3.msra.mxu0 %v983_v55 }
 0x524   :  { %1844 = vmatprep.subr.mxu0 %v2052_v0 }
 0x525   :  { %1845 = vmatpush3.msra.mxu0 %v982_v57 }
 0x526   :  { %1846 = vmatprep.subr.mxu0 %v2052_v0 }
 0x527   :  { %1847 = vmatpush3.msra.mxu0 %v981_v58 }
 0x528   :  { %1848 = vmatprep.subr.mxu0 %v2052_v0 }
 0x529   :  { %1849 = vmatpush3.msra.mxu0 %v980_v59 }
 0x52a   :  { %1850 = vmatprep.subr.mxu0 %v2052_v0 }
 0x52b   :  { %1851 = vmatpush3.msra.mxu0 %v979_v60 }
 0x52c   :  { %1852 = vmatprep.subr.mxu0 %v2052_v0 }
 0x52d   :  { %1853 = vmatpush3.msra.mxu0 %v978_v61 }
 0x52e   :  { %1854 = vmatprep.subr.mxu0 %v2052_v0 }
 0x52f   :  { %1855 = vmatpush3.msra.mxu0 %v977_v62 }
 0x530   :  { %1856 = vmatprep.subr.mxu0 %v2052_v0 }
 0x531   :  { %1857 = vmatpush3.msra.mxu0 %v976_v63 }
 0x532   :  { %1858 = vmatprep.subr.mxu0 %v2052_v0 }
 0x533   :  { %1859 = vmatpush3.msra.mxu0 %v975_v1 }
 0x534   :  { %1898 = vmatprep.subr.mxu0 %v2052_v0 }
 0x5d4   :  { %v815_v18 = vpop.f32.mrf.mxu0 }
 0x5d5   :  { %v819_v19 = vrot.slane %v815_v18, 4 }
 0x5d6   :  { %v1792_v20 = vpop.f32.mrf.mxu0 }
 0x5d7   :  { %v820_v21 = vadd.f32 %v819_v19, %v815_v18 }
 0x5d9   :  { %v821_v22 = vrot.slane %v820_v21, 2 }
 0x5db   :  { %v822_v23 = vadd.f32 %v821_v22, %v820_v21  ;;  %v956_v21 = vld [vmem:[#allocation7 + $0xa] sm:$0x1] }
 0x5dd   :  { %v823_v24 = vrot.slane %v822_v23, 1 }
 0x5df   :  { %v824_v25 = vadd.f32 %v823_v24, %v822_v23  ;;  %v960_v24 = vld [vmem:[#allocation7 + $0xb] sm:$0x1] }
 0x5e1   :  { %v825_v26 = vmul.f32 0.125, %v824_v25 }
 0x5e3   :  { %v826_v27 = vsub.f32 %v815_v18, %v825_v26 }
 0x5e5   :  { %v827_v28 = vmul.f32 %v826_v27, %v826_v27 }
 0x5e7   :  { %v828_v29 = vrot.slane %v827_v28, 4 }
 0x5e9   :  { %v829_v30 = vadd.f32 %v828_v29, %v827_v28 }
 0x5eb   :  { %v830_v31 = vrot.slane %v829_v30, 2 }
 0x5ed   :  { %v831_v32 = vadd.f32 %v830_v31, %v829_v30 }
 0x5ef   :  { %v832_v33 = vrot.slane %v831_v32, 1 }
 0x5f1   :  { %v833_v34 = vadd.f32 %v832_v33, %v831_v32  ;;  %v1111_v32 = vld [vmem:[#allocation5 + $0x4f8] sm:$0xff]  ;;  %v1110_v33 = vld [vmem:[#allocation5 + $0x4f0] sm:$0xff] }
 0x5f3   :  { %v834_v35 = vmul.f32 0.125, %v833_v34  ;;  %v1109_v34 = vld [vmem:[#allocation5 + $0x4e8] sm:$0xff] }
 0x5f5   :  { %v836_v36 = vadd.f32 1e-05, %v834_v35  ;;  %v1108_v35 = vld [vmem:[#allocation5 + $0x4e0] sm:$0xff] }
 0x5f7   :  { %1951 = vrsqrt.f32 %v836_v36  ;;  %v1107_v36 = vld [vmem:[#allocation5 + $0x4d8] sm:$0xff] }
 0x604   :  { %v1952_v38 = vpop.eup %1951 }
 0x605   :  { %v838_v39 = vmul.f32 %v1952_v38, %v835_v37  ;;  %v1106_v37 = vld [vmem:[#allocation5 + $0x4d0] sm:$0xff]  ;;  %v1105_v38 = vld [vmem:[#allocation5 + $0x4c8] sm:$0xff] }
 0x607   :  { %v840_v41 = vmul.f32 %v838_v39, %v825_v26  ;;  %v845_v42 = vrot.slane %v838_v39, %v2133_v56  ;;  %v1104_v39 = vld [vmem:[#allocation5 + $0x4c0] sm:$0xff] }
 0x609   :  { %v841_v43 = vsub.f32 %v839_v40, %v840_v41  ;;  %v846_v44 = vmul.f32 %v845_v42, %v815_v18  ;;  %v1103_v40 = vld [vmem:[#allocation5 + $0x4b8] sm:$0xff]  ;;  %v1102_v41 = vld [vmem:[#allocation5 + $0x4b0] sm:$0xff]  ;;  %v1101_v42 = vld [vmem:[#allocation5 + $0x4a8] sm:$0xff] }
 0x60b   :  { %v850_v45 = vrot.slane %v841_v43, %v2133_v56  ;;  %v1100_v43 = vld [vmem:[#allocation5 + $0x4a0] sm:$0xff] }
 0x60d   :  { %v851_v46 = vadd.f32 %v850_v45, %v846_v44  ;;  %v1099_v44 = vld [vmem:[#allocation5 + $0x498] sm:$0xff]  ;;  %v1098_v45 = vld [vmem:[#allocation5 + $0x490] sm:$0xff] }
 0x60f   :  { %v852_v47 = vmax.f32 %v851_v46, 0.0  ;;  %v1097_v46 = vld [vmem:[#allocation5 + $0x488] sm:$0xff] }
 0x611   :  { %1826 = vmatmul.mubr.f32.vlgmr.msra.gmra.mxu1 %v852_v47  ;;  %v1096_v47 = vld [vmem:[#allocation5 + $0x480] sm:$0xff] }
 0x612   :  { %1895 = vmatprep.mubr.msk.f32.mxu1 %vm2053_vm0, %v2052_v0  ;;  %1864 = vmatpush3.msra.mxu1 %v1111_v32 }
 0x613   :  { %1865 = vmatprep.subr.mxu1 %v2052_v0 }
 0x614   :  { %1866 = vmatpush3.msra.mxu1 %v1110_v33 }
 0x615   :  { %1867 = vmatprep.subr.mxu1 %v2052_v0 }
 0x616   :  { %1868 = vmatpush3.msra.mxu1 %v1109_v34 }
 0x617   :  { %1869 = vmatprep.subr.mxu1 %v2052_v0 }
 0x618   :  { %1870 = vmatpush3.msra.mxu1 %v1108_v35 }
 0x619   :  { %1871 = vmatprep.subr.mxu1 %v2052_v0 }
 0x61a   :  { %1872 = vmatpush3.msra.mxu1 %v1107_v36 }
 0x61b   :  { %1873 = vmatprep.subr.mxu1 %v2052_v0 }
 0x61c   :  { %1874 = vmatpush3.msra.mxu1 %v1106_v37 }
 0x61d   :  { %1875 = vmatprep.subr.mxu1 %v2052_v0 }
 0x61e   :  { %1876 = vmatpush3.msra.mxu1 %v1105_v38 }
 0x61f   :  { %1877 = vmatprep.subr.mxu1 %v2052_v0 }
 0x620   :  { %1878 = vmatpush3.msra.mxu1 %v1104_v39 }
 0x621   :  { %1879 = vmatprep.subr.mxu1 %v2052_v0 }
 0x622   :  { %1880 = vmatpush3.msra.mxu1 %v1103_v40 }
 0x623   :  { %1881 = vmatprep.subr.mxu1 %v2052_v0 }
 0x624   :  { %1882 = vmatpush3.msra.mxu1 %v1102_v41 }
 0x625   :  { %1883 = vmatprep.subr.mxu1 %v2052_v0 }
 0x626   :  { %1884 = vmatpush3.msra.mxu1 %v1101_v42 }
 0x627   :  { %1885 = vmatprep.subr.mxu1 %v2052_v0 }
 0x628   :  { %1886 = vmatpush3.msra.mxu1 %v1100_v43 }
 0x629   :  { %1887 = vmatprep.subr.mxu1 %v2052_v0 }
 0x62a   :  { %1888 = vmatpush3.msra.mxu1 %v1099_v44 }
 0x62b   :  { %1889 = vmatprep.subr.mxu1 %v2052_v0 }
 0x62c   :  { %1890 = vmatpush3.msra.mxu1 %v1098_v45 }
 0x62d   :  { %1891 = vmatprep.subr.mxu1 %v2052_v0 }
 0x62e   :  { %1892 = vmatpush3.msra.mxu1 %v1097_v46 }
 0x62f   :  { %1893 = vmatprep.subr.mxu1 %v2052_v0 }
 0x630   :  { %1894 = vmatpush3.msra.mxu1 %v1096_v47 }
 0x6d1   :  { %v936_v2 = vpop.f32.mrf.mxu1 }
 0x6d2   :  { %v940_v3 = vrot.slane %v936_v2, 4 }
 0x6d3   :  { %v1827_v4 = vpop.f32.mrf.mxu1 }
 0x6d4   :  { %v941_v5 = vadd.f32 %v940_v3, %v936_v2 }
 0x6d6   :  { %v942_v6 = vrot.slane %v941_v5, 2 }
 0x6d8   :  { %v943_v7 = vadd.f32 %v942_v6, %v941_v5  ;;  %v1077_v5 = vld [vmem:[#allocation7 + $0xc] sm:$0x1] }
 0x6da   :  { %v944_v8 = vrot.slane %v943_v7, 1 }
 0x6dc   :  { %v945_v9 = vadd.f32 %v944_v8, %v943_v7  ;;  %v1081_v8 = vld [vmem:[#allocation7 + $0xd] sm:$0x1] }
 0x6de   :  { %v946_v10 = vmul.f32 0.125, %v945_v9 }
 0x6e0   :  { %v947_v11 = vsub.f32 %v936_v2, %v946_v10 }
 0x6e2   :  { %v948_v12 = vmul.f32 %v947_v11, %v947_v11 }
 0x6e4   :  { %v949_v13 = vrot.slane %v948_v12, 4 }
 0x6e6   :  { %v950_v14 = vadd.f32 %v949_v13, %v948_v12 }
 0x6e8   :  { %v951_v15 = vrot.slane %v950_v14, 2 }
 0x6ea   :  { %v952_v16 = vadd.f32 %v951_v15, %v950_v14 }
 0x6ec   :  { %v953_v17 = vrot.slane %v952_v16, 1 }
 0x6ee   :  { %v954_v18 = vadd.f32 %v953_v17, %v952_v16  ;;  %v1232_v16 = vld [vmem:[#allocation5 + $0x578] sm:$0xff]  ;;  %v1231_v17 = vld [vmem:[#allocation5 + $0x570] sm:$0xff] }
 0x6f0   :  { %v955_v19 = vmul.f32 0.125, %v954_v18  ;;  %v1230_v18 = vld [vmem:[#allocation5 + $0x568] sm:$0xff] }
 0x6f2   :  { %v957_v20 = vadd.f32 1e-05, %v955_v19  ;;  %v1229_v19 = vld [vmem:[#allocation5 + $0x560] sm:$0xff] }
 0x6f4   :  { %1953 = vrsqrt.f32 %v957_v20  ;;  %v1228_v20 = vld [vmem:[#allocation5 + $0x558] sm:$0xff] }
 0x701   :  { %v1954_v22 = vpop.eup %1953 }
 0x702   :  { %v959_v23 = vmul.f32 %v1954_v22, %v956_v21  ;;  %v1227_v21 = vld [vmem:[#allocation5 + $0x550] sm:$0xff]  ;;  %v1226_v22 = vld [vmem:[#allocation5 + $0x548] sm:$0xff] }
 0x704   :  { %v961_v25 = vmul.f32 %v959_v23, %v946_v10  ;;  %v966_v26 = vrot.slane %v959_v23, %v2133_v56  ;;  %v1225_v23 = vld [vmem:[#allocation5 + $0x540] sm:$0xff] }
 0x706   :  { %v962_v27 = vsub.f32 %v960_v24, %v961_v25  ;;  %v967_v28 = vmul.f32 %v966_v26, %v936_v2  ;;  %v1224_v24 = vld [vmem:[#allocation5 + $0x538] sm:$0xff]  ;;  %v1223_v25 = vld [vmem:[#allocation5 + $0x530] sm:$0xff]  ;;  %v1222_v26 = vld [vmem:[#allocation5 + $0x528] sm:$0xff] }
 0x708   :  { %v971_v29 = vrot.slane %v962_v27, %v2133_v56  ;;  %v1221_v27 = vld [vmem:[#allocation5 + $0x520] sm:$0xff] }
 0x70a   :  { %v972_v30 = vadd.f32 %v971_v29, %v967_v28  ;;  %v1220_v28 = vld [vmem:[#allocation5 + $0x518] sm:$0xff]  ;;  %v1219_v29 = vld [vmem:[#allocation5 + $0x510] sm:$0xff] }
 0x70c   :  { %v973_v31 = vmax.f32 %v972_v30, 0.0  ;;  %v1218_v30 = vld [vmem:[#allocation5 + $0x508] sm:$0xff] }
 0x70e   :  { %1861 = vmatmul.mubr.f32.vlgmr.msra.gmra.mxu0 %v973_v31  ;;  %v1217_v31 = vld [vmem:[#allocation5 + $0x500] sm:$0xff] }
 0x70f   :  { %1930 = vmatprep.mubr.msk.f32.mxu0 %vm2053_vm0, %v2052_v0  ;;  %1899 = vmatpush3.msra.mxu0 %v1232_v16 }
 0x710   :  { %1900 = vmatprep.subr.mxu0 %v2052_v0 }
 0x711   :  { %1901 = vmatpush3.msra.mxu0 %v1231_v17 }
 0x712   :  { %1902 = vmatprep.subr.mxu0 %v2052_v0 }
 0x713   :  { %1903 = vmatpush3.msra.mxu0 %v1230_v18  ;;  %v1319_v18 = vld [vmem:[#allocation7 + $0x10] sm:$0x1] }
 0x714   :  { %1904 = vmatprep.subr.mxu0 %v2052_v0 }
 0x715   :  { %1905 = vmatpush3.msra.mxu0 %v1229_v19 }
 0x716   :  { %1906 = vmatprep.subr.mxu0 %v2052_v0 }
 0x717   :  { %1907 = vmatpush3.msra.mxu0 %v1228_v20 }
 0x718   :  { %1908 = vmatprep.subr.mxu0 %v2052_v0 }
 0x719   :  { %1909 = vmatpush3.msra.mxu0 %v1227_v21  ;;  %v1323_v21 = vld [vmem:[#allocation7 + $0x11] sm:$0x1] }
 0x71a   :  { %1910 = vmatprep.subr.mxu0 %v2052_v0 }
 0x71b   :  { %1911 = vmatpush3.msra.mxu0 %v1226_v22 }
 0x71c   :  { %1912 = vmatprep.subr.mxu0 %v2052_v0 }
 0x71d   :  { %1913 = vmatpush3.msra.mxu0 %v1225_v23 }
 0x71e   :  { %1914 = vmatprep.subr.mxu0 %v2052_v0 }
 0x71f   :  { %1915 = vmatpush3.msra.mxu0 %v1224_v24 }
 0x720   :  { %1916 = vmatprep.subr.mxu0 %v2052_v0 }
 0x721   :  { %1917 = vmatpush3.msra.mxu0 %v1223_v25 }
 0x722   :  { %1918 = vmatprep.subr.mxu0 %v2052_v0 }
 0x723   :  { %1919 = vmatpush3.msra.mxu0 %v1222_v26 }
 0x724   :  { %1920 = vmatprep.subr.mxu0 %v2052_v0 }
 0x725   :  { %1921 = vmatpush3.msra.mxu0 %v1221_v27 }
 0x726   :  { %1922 = vmatprep.subr.mxu0 %v2052_v0 }
 0x727   :  { %1923 = vmatpush3.msra.mxu0 %v1220_v28 }
 0x728   :  { %1924 = vmatprep.subr.mxu0 %v2052_v0 }
 0x729   :  { %1925 = vmatpush3.msra.mxu0 %v1219_v29 }
 0x72a   :  { %1926 = vmatprep.subr.mxu0 %v2052_v0 }
 0x72b   :  { %1927 = vmatpush3.msra.mxu0 %v1218_v30 }
 0x72c   :  { %1928 = vmatprep.subr.mxu0 %v2052_v0 }
 0x72d   :  { %1929 = vmatpush3.msra.mxu0 %v1217_v31 }
 0x7ce   :  { %v1057_v48 = vpop.f32.mrf.mxu0 }
 0x7cf   :  { %v1061_v49 = vrot.slane %v1057_v48, 4 }
 0x7d0   :  { %v1862_v50 = vpop.f32.mrf.mxu0 }
 0x7d1   :  { %v1062_v51 = vadd.f32 %v1061_v49, %v1057_v48  ;;  %v1198_v50 = vld [vmem:[#allocation7 + $0xe] sm:$0x1] }
 0x7d3   :  { %v1063_v52 = vrot.slane %v1062_v51, 2 }
 0x7d5   :  { %v1064_v53 = vadd.f32 %v1063_v52, %v1062_v51 }
 0x7d7   :  { %v1065_v54 = vrot.slane %v1064_v53, 1 }
 0x7d9   :  { %v1066_v55 = vadd.f32 %v1065_v54, %v1064_v53  ;;  %v1202_v53 = vld [vmem:[#allocation7 + $0xf] sm:$0x1] }
 0x7db   :  { %v1067_v57 = vmul.f32 0.125, %v1066_v55 }
 0x7dd   :  { %v1068_v58 = vsub.f32 %v1057_v48, %v1067_v57 }
 0x7df   :  { %v1069_v59 = vmul.f32 %v1068_v58, %v1068_v58 }
 0x7e1   :  { %v1070_v60 = vrot.slane %v1069_v59, 4 }
 0x7e3   :  { %v1071_v61 = vadd.f32 %v1070_v60, %v1069_v59 }
 0x7e5   :  { %v1072_v62 = vrot.slane %v1071_v61, 2 }
 0x7e7   :  { %v1073_v63 = vadd.f32 %v1072_v62, %v1071_v61 }
 0x7e9   :  { %v1074_v1 = vrot.slane %v1073_v63, 1 }
 0x7eb   :  { %v1075_v2 = vadd.f32 %v1074_v1, %v1073_v63 }
 0x7ed   :  { %v1076_v3 = vmul.f32 0.125, %v1075_v2 }
 0x7ef   :  { %v1078_v4 = vadd.f32 1e-05, %v1076_v3 }
 0x7f1   :  { %1955 = vrsqrt.f32 %v1078_v4 }
 0x7fe   :  { %v1956_v6 = vpop.eup %1955 }
 0x7ff   :  { %v1080_v7 = vmul.f32 %v1956_v6, %v1077_v5 }
 0x801   :  { %v1082_v9 = vmul.f32 %v1080_v7, %v1067_v57  ;;  %v1087_v10 = vrot.slane %v1080_v7, %v2133_v56 }
 0x803   :  { %v1083_v11 = vsub.f32 %v1081_v8, %v1082_v9  ;;  %v1088_v12 = vmul.f32 %v1087_v10, %v1057_v48 }
 0x805   :  { %v1092_v13 = vrot.slane %v1083_v11, %v2133_v56 }
 0x807   :  { %v1093_v14 = vadd.f32 %v1092_v13, %v1088_v12 }
 0x809   :  { %v1094_v15 = vmax.f32 %v1093_v14, 0.0 }
 0x80b   :  { %1896 = vmatmul.mubr.f32.vlgmr.msra.gmra.mxu1 %v1094_v15 }
 0x8cb   :  { %v1178_v32 = vpop.f32.mrf.mxu1 }
 0x8cc   :  { %v1182_v33 = vrot.slane %v1178_v32, 4 }
 0x8cd   :  { %v1897_v34 = vpop.f32.mrf.mxu1 }
 0x8ce   :  { %v1183_v35 = vadd.f32 %v1182_v33, %v1178_v32 }
 0x8d0   :  { %v1184_v36 = vrot.slane %v1183_v35, 2 }
 0x8d2   :  { %v1185_v37 = vadd.f32 %v1184_v36, %v1183_v35 }
 0x8d4   :  { %v1186_v38 = vrot.slane %v1185_v37, 1 }
 0x8d6   :  { %v1187_v39 = vadd.f32 %v1186_v38, %v1185_v37 }
 0x8d8   :  { %v1188_v40 = vmul.f32 0.125, %v1187_v39 }
 0x8da   :  { %v1189_v41 = vsub.f32 %v1178_v32, %v1188_v40 }
 0x8dc   :  { %v1190_v42 = vmul.f32 %v1189_v41, %v1189_v41 }
 0x8de   :  { %v1191_v43 = vrot.slane %v1190_v42, 4 }
 0x8e0   :  { %v1192_v44 = vadd.f32 %v1191_v43, %v1190_v42 }
 0x8e2   :  { %v1193_v45 = vrot.slane %v1192_v44, 2 }
 0x8e4   :  { %v1194_v46 = vadd.f32 %v1193_v45, %v1192_v44 }
 0x8e6   :  { %v1195_v47 = vrot.slane %v1194_v46, 1 }
 0x8e8   :  { %v1196_v48 = vadd.f32 %v1195_v47, %v1194_v46 }
 0x8ea   :  { %v1197_v49 = vmul.f32 0.125, %v1196_v48 }
 0x8ec   :  { %v1199_v0 = vadd.f32 1e-05, %v1197_v49 }
 0x8ee   :  { %1957 = vrsqrt.f32 %v1199_v0 }
 0x8fb   :  { %v1958_v51 = vpop.eup %1957 }
 0x8fc   :  { %v1201_v52 = vmul.f32 %v1958_v51, %v1198_v50 }
 0x8fe   :  { %v1203_v54 = vmul.f32 %v1201_v52, %v1188_v40  ;;  %v1208_v55 = vrot.slane %v1201_v52, %v2133_v56 }
 0x900   :  { %v1204_v57 = vsub.f32 %v1202_v53, %v1203_v54  ;;  %v1209_v58 = vmul.f32 %v1208_v55, %v1178_v32 }
 0x902   :  { %v1213_v59 = vrot.slane %v1204_v57, %v2133_v56 }
 0x904   :  { %v1214_v60 = vadd.f32 %v1213_v59, %v1209_v58 }
 0x906   :  { %v1215_v61 = vmax.f32 %v1214_v60, 0.0 }
 0x908   :  { %1931 = vmatmul.mubr.f32.vlgmr.msra.gmra.mxu0 %v1215_v61 }
 0x9c8   :  { %v1299_v62 = vpop.f32.mrf.mxu0 }
 0x9c9   :  { %v1303_v63 = vrot.slane %v1299_v62, 4 }
 0x9ca   :  { %v1932_v1 = vpop.f32.mrf.mxu0 }
 0x9cb   :  { %v1304_v2 = vadd.f32 %v1303_v63, %v1299_v62 }
 0x9cd   :  { %v1305_v3 = vrot.slane %v1304_v2, 2 }
 0x9cf   :  { %v1306_v4 = vadd.f32 %v1305_v3, %v1304_v2 }
 0x9d1   :  { %v1307_v5 = vrot.slane %v1306_v4, 1 }
 0x9d3   :  { %v1308_v6 = vadd.f32 %v1307_v5, %v1306_v4 }
 0x9d5   :  { %v1309_v7 = vmul.f32 0.125, %v1308_v6 }
 0x9d7   :  { %v1310_v8 = vsub.f32 %v1299_v62, %v1309_v7 }
 0x9d9   :  { %v1311_v9 = vmul.f32 %v1310_v8, %v1310_v8 }
 0x9db   :  { %v1312_v10 = vrot.slane %v1311_v9, 4 }
 0x9dd   :  { %v1313_v11 = vadd.f32 %v1312_v10, %v1311_v9 }
 0x9df   :  { %v1314_v12 = vrot.slane %v1313_v11, 2 }
 0x9e1   :  { %v1315_v13 = vadd.f32 %v1314_v12, %v1313_v11 }
 0x9e3   :  { %v1316_v14 = vrot.slane %v1315_v13, 1 }
 0x9e5   :  { %v1317_v15 = vadd.f32 %v1316_v14, %v1315_v13 }
 0x9e7   :  { %v1318_v16 = vmul.f32 0.125, %v1317_v15 }
 0x9e9   :  { %v1320_v17 = vadd.f32 1e-05, %v1318_v16 }
 0x9eb   :  { %1959 = vrsqrt.f32 %v1320_v17 }
 0x9f8   :  { %v1960_v19 = vpop.eup %1959 }
 0x9f9   :  { %v1322_v20 = vmul.f32 %v1960_v19, %v1319_v18 }
 0x9fb   :  { %v1324_v22 = vmul.f32 %v1322_v20, %v1309_v7  ;;  %v1329_v23 = vrot.slane %v1322_v20, %v2133_v56 }
 0x9fd   :  { %v1325_v24 = vsub.f32 %v1323_v21, %v1324_v22  ;;  %v1330_v25 = vmul.f32 %v1329_v23, %v1299_v62 }
 0x9ff   :  { %v1334_v26 = vrot.slane %v1325_v24, %v2133_v56 }
 0xa01   :  { %v1335_v27 = vadd.f32 %v1334_v26, %v1330_v25 }
 0xa03   :  { %1336 = vst [vmem:[#allocation8] sm:$0xff] %v1335_v27 }
 0xa04   :  { %2032 = shalt.err (!%p2029_p5)
}
 0xa05   :  { %1352 = dma.vmem_to_hbm [thread:$0]  %s1347_s2, 384, %s2320_s3, [#allocation4], %s2049_s17, %s2049_s17, %s2050_s18  }
 0xa06   :  { %2045 = dma.done.wait [#allocation4], 384  }
 0xa07   :  { %2046 = vsyncadd [#allocation4], 4294966912 }
 0xa08   :  { %1356 = vsyncpa [#allocation3], 1 }
 0xa09   :  { %1357 = vsyncpa [#allocation6], 1 }
 0xa0a   :  { %1358 = vsyncpa [#allocation4], 1 }

</bundles_post_ra>
